<compile_context>
chip_gen: v5e
topology: v5e:2x2
jax: 0.10.0
libtpu: 0.0.40
codegen_flags: <defaults>
</compile_context>

<pallas_src>
import math
from typing import NamedTuple

import jax
import jax.numpy as jnp
from jax.experimental import pallas as pl
from jax.experimental.pallas import tpu as pltpu

_SELU_ALPHA = 1.6732632423543772
_SELU_SCALE = 1.0507009873554805

# Fixed per-grid-step cost (~0.35us) expressed in "HBM-byte equivalents" at
# ~1.4 TB/s, used by the tile chooser.
_STEP_OVERHEAD_BYTES = 500_000


def _round_up(x: int, m: int) -> int:
    return (x + m - 1) // m * m


def _apply_activation(x, activation):
    """selu / relu / silu (module semantics: unknown string -> silu) or callable."""
    if callable(activation):
        return activation(x)
    if activation == "relu":
        return jnp.maximum(x, 0.0)
    if activation == "selu":
        # Clamp the exp argument so large positives never generate inf on the EUP.
        return _SELU_SCALE * jnp.where(
            x > 0, x, _SELU_ALPHA * (jnp.exp(jnp.minimum(x, 0.0)) - 1.0)
        )
    return x * jax.nn.sigmoid(x)  # silu


def _choose_tiling(n: int, tile_cap: int) -> tuple:
    """Pick (tile, n_p): tile is a multiple of 128 dividing n_p.

    Minimizes padded adjacency bytes (n_p^2, dominant int8 stream) plus fixed
    per-grid-step overhead, instead of rounding n up to a whole max-size tile.
    (v7x note: for large n an even number of row tiles load-balances the
    'parallel' axis across the 2 TensorCores.)
    """
    tile_cap = max(128, (tile_cap // 128) * 128)
    best = None
    for t in range(128, tile_cap + 1, 128):
        n_p = _round_up(n, t)
        steps = (n_p // t) ** 2
        cost = n_p * n_p + steps * _STEP_OVERHEAD_BYTES
        if best is None or cost < best[0]:
            best = (cost, t, n_p)
    return best[1], best[2]


class PreparedAdjacency(NamedTuple):
    data: jax.Array  # [n_p, n_p] zero-padded adjacency in storage dtype
    n: int
    n_p: int
    tile: int


def prepare_adjacency(graph, *, tile_cap: int = 1024, adj_dtype=jnp.int8):
    """Cast + pad the adjacency once (hoist out of stacked GCN layers).

    adj_dtype=int8 / bfloat16 are exact only for 0/1 adjacencies; pass
    jnp.float32 for weighted graphs (the aggregation dot then stays f32).
    """
    n = graph.shape[0]
    tile, n_p = _choose_tiling(n, tile_cap)
    g = jnp.pad(jnp.asarray(graph, adj_dtype), ((0, n_p - n), (0, n_p - n)))
    return PreparedAdjacency(g, n, n_p, tile)


# --------------------------------------------------------------------------- #
# Fused kernel: out = act( (feat_i @ W) * skip + sum_k graph[i,k] @ (feat_k @ W) + bias )
# grid = (row_tiles, k_tiles); f32 accumulator resident across the K axis.
# --------------------------------------------------------------------------- #
def _make_gcn_kernel(activation, use_skip: bool):
    def kernel(feat_k_ref, feat_i_ref, w_ref, skip_ref, bias_ref, graph_ref,
               out_ref, acc_ref):
        k = pl.program_id(1)

        @pl.when(k == 0)
        def _init():
            if use_skip:
                # Skip term in full f32 (conv_w resident; feat_i constant per row tile).
                xw_i = jnp.dot(feat_i_ref[...], w_ref[...],
                               preferred_element_type=jnp.float32)
                acc_ref[...] = xw_i * skip_ref[...]
            else:
                acc_ref[...] = jnp.zeros_like(acc_ref)

        # Recompute the K-tile of xw from the (small) features stream.
        xw_k = jnp.dot(feat_k_ref[...], w_ref[...],
                       preferred_element_type=jnp.float32)

        g = graph_ref[...]
        if g.dtype == jnp.float32:
            # Weighted-graph path: keep the aggregation matmul in f32.
            rhs = xw_k
        else:
            # int8 (or bf16) storage: VPU cast to bf16, bf16 x bf16 MXU matmul
            # with f32 accumulation (exact for 0/1 adjacency).
            g = g.astype(jnp.bfloat16)
            rhs = xw_k.astype(jnp.bfloat16)
        acc_ref[...] += jnp.dot(g, rhs, preferred_element_type=jnp.float32)

        @pl.when(k == pl.num_programs(1) - 1)
        def _finalize():
            out_ref[...] = _apply_activation(
                acc_ref[...] + bias_ref[...], activation
            ).astype(out_ref.dtype)

    return kernel


def gcn_layer_forward(
    features,
    graph,
    conv_w,
    skip_w=None,
    bias=None,
    *,
    activation="selu",
    adj_dtype=jnp.int8,        # exact for 0/1 adjacency; use jnp.float32 for weighted graphs
    tile_cap: int = 1024,      # node-axis tile cap (rows and K)
    min_pallas_nodes: int = 128,
    prepared_graph: PreparedAdjacency = None,
):
    """Pallas GCN layer forward. Returns (updated_features, graph_f32)."""
    features = jnp.asarray(features, jnp.float32)
    graph_f32 = jnp.asarray(graph, jnp.float32)
    conv_w = jnp.asarray(conv_w, jnp.float32)

    n, in_dim = features.shape
    out_dim = conv_w.shape[1]

    # Tiny graphs: fixed per-step Pallas overhead dominates; fused XLA path.
    if n < min_pallas_nodes:
        xw = features @ conv_w
        out = xw * skip_w + graph_f32 @ xw if skip_w is not None else graph_f32 @ xw
        if bias is not None:
            out = out + bias
        return _apply_activation(out, activation), graph_f32

    if prepared_graph is None:
        prepared_graph = prepare_adjacency(graph, tile_cap=tile_cap, adj_dtype=adj_dtype)
    assert prepared_graph.n == n, "prepared adjacency does not match feature count"
    graph_p = prepared_graph.data
    tile, n_p = prepared_graph.tile, prepared_graph.n_p
    n_tiles = n_p // tile

    # Lane-dense padded channel dim (multiple of 128 -> unmasked stores, full MXU
    # result width).  Zero padding everywhere -> padded region of the pre-bias
    # accumulator is exactly 0 and is sliced off below.
    od_p = _round_up(out_dim, 128)
    feat_p = jnp.pad(features, ((0, n_p - n), (0, 0)))
    w_p = jnp.pad(conv_w, ((0, 0), (0, od_p - out_dim)))
    if skip_w is not None:
        skip_p = jnp.pad(jnp.asarray(skip_w, jnp.float32), (0, od_p - out_dim)).reshape(1, od_p)
    else:
        skip_p = jnp.zeros((1, od_p), jnp.float32)
    if bias is not None:
        bias_p = jnp.pad(jnp.asarray(bias, jnp.float32), (0, od_p - out_dim)).reshape(1, od_p)
    else:
        bias_p = jnp.zeros((1, od_p), jnp.float32)

    out_p = pl.pallas_call(
        _make_gcn_kernel(activation, skip_w is not None),
        out_shape=jax.ShapeDtypeStruct((n_p, od_p), jnp.float32),
        grid_spec=pltpu.PrefetchScalarGridSpec(
            num_scalar_prefetch=0,
            grid=(n_tiles, n_tiles),  # (row tiles parallel, K tiles arbitrary/last)
            in_specs=[
                # features K-tile (operand of graph @ xw), changes every k step.
                pl.BlockSpec((tile, in_dim), lambda i, k: (k, 0)),
                # features row-tile for the skip term: constant across k (resident).
                pl.BlockSpec((tile, in_dim), lambda i, k: (i, 0)),
                # conv_w: resident for the whole grid.
                pl.BlockSpec((in_dim, od_p), lambda i, k: (0, 0)),
                # skip / bias: broadcast over rows, resident.
                pl.BlockSpec((1, od_p), lambda i, k: (0, 0)),
                pl.BlockSpec((1, od_p), lambda i, k: (0, 0)),
                # Adjacency tile: the dominant HBM stream (int8 by default).
                pl.BlockSpec((tile, tile), lambda i, k: (i, k)),
            ],
            out_specs=pl.BlockSpec((tile, od_p), lambda i, k: (i, 0)),
            scratch_shapes=[pltpu.VMEM((tile, od_p), jnp.float32)],
        ),
        compiler_params=pltpu.CompilerParams(
            dimension_semantics=("parallel", "arbitrary")
        ),
    )(feat_p, feat_p, w_p, skip_p, bias_p, graph_p)

    return out_p[:n, :out_dim], graph_f32


def _reference_forward(features, graph, conv_w, skip_w=None, bias=None, activation="selu"):
    """Pure-JAX reference mirroring the PyTorch forward (full f32 matmuls)."""
    features = jnp.asarray(features, jnp.float32)
    graph = jnp.asarray(graph, jnp.float32)
    xw = jnp.dot(features, conv_w, precision="highest")
    if skip_w is not None:
        out = xw * skip_w + jnp.dot(graph, xw, precision="highest")
    else:
        out = jnp.dot(graph, xw, precision="highest")
    if bias is not None:
        out = out + bias
    return _apply_activation(out, activation), graph


if __name__ == "__main__":
    # N=300 nodes (not a tile multiple -> exercises 128-padding), in_dim=64,
    # out_dim=32 (exercises 128-lane output padding).
    N, IN_DIM, OUT_DIM = 300, 64, 32

    key = jax.random.PRNGKey(0)
    k_feat, k_graph, k_w, k_skip = jax.random.split(key, 4)

    features = jax.random.normal(k_feat, (N, IN_DIM), dtype=jnp.float32)
    # Sparse-ish symmetric 0/1 adjacency with self loops (int8/bf16-exact values).
    adj = (jax.random.uniform(k_graph, (N, N)) > 0.9).astype(jnp.float32)
    graph = jnp.minimum(adj + adj.T + jnp.eye(N, dtype=jnp.float32), 1.0)

    # Parameter init matching the module: U(-stdv, stdv), stdv = 1/sqrt(out_dim).
    stdv = 1.0 / math.sqrt(OUT_DIM)
    conv_w = jax.random.uniform(
        k_w, (IN_DIM, OUT_DIM), minval=-stdv, maxval=stdv, dtype=jnp.float32
    )
    skip_w = jax.random.uniform(
        k_skip, (OUT_DIM,), minval=-stdv, maxval=stdv, dtype=jnp.float32
    )
    # bias=False in the default config -> no bias parameter.

    ref_out, ref_graph = _reference_forward(features, graph, conv_w, skip_w)

    def _check(out):
        # Tolerance covers the bf16 rounding of xw feeding the graph matmul
        # (accumulation stays f32); structural bugs give O(1)+ errors.
        max_err = float(jnp.max(jnp.abs(out - ref_out)))
        rel_err = float(jnp.linalg.norm(out - ref_out) / jnp.linalg.norm(ref_out))
        assert out.shape == (N, OUT_DIM)
        assert max_err < 0.15 and rel_err < 1e-2, (max_err, rel_err)

    # (1) Default tiling: tile chooser picks a single 384-node tile (1x1 grid).
    out1, graph_out = gcn_layer_forward(features, graph, conv_w, skip_w)
    out1 = jax.block_until_ready(out1)
    _check(out1)
    assert jnp.array_equal(graph_out, ref_graph)

    # (2) Pre-prepared (hoisted cast/pad) adjacency with tile_cap=128 -> 3x3 grid,
    #     exercising the multi-step accumulator init / accumulate / finalize path.
    prep = prepare_adjacency(graph, tile_cap=128)
    out2, _ = gcn_layer_forward(features, graph, conv_w, skip_w, prepared_graph=prep)
    out2 = jax.block_until_ready(out2)
    _check(out2)

    # (3) Tiny-graph XLA fallback path.
    out3, _ = gcn_layer_forward(features[:64], graph[:64, :64], conv_w, skip_w)
    ref3, _ = _reference_forward(features[:64], graph[:64, :64], conv_w, skip_w)
    assert jnp.allclose(jax.block_until_ready(out3), ref3, atol=1e-4, rtol=1e-4)

    print("KERNEL_OK")
</pallas_src>

<mosaic_0001>
module attributes {stable_mosaic.version = 11 : i64} {
  func.func @kernel(%arg0: i32, %arg1: i32, %arg2: memref<384x64xf32, #tpu.memory_space<vmem>>, %arg3: memref<384x64xf32, #tpu.memory_space<vmem>>, %arg4: memref<64x128xf32, #tpu.memory_space<vmem>>, %arg5: memref<1x128xf32, #tpu.memory_space<vmem>>, %arg6: memref<1x128xf32, #tpu.memory_space<vmem>>, %arg7: memref<384x384xi8, #tpu.memory_space<vmem>>, %arg8: memref<384x128xf32, #tpu.memory_space<vmem>>, %arg9: memref<384x128xf32, #tpu.memory_space<vmem>>) attributes {dimension_semantics = [#tpu.dimension_semantics<parallel>, #tpu.dimension_semantics<arbitrary>], iteration_bounds = array<i64: 1, 1>, scalar_prefetch = 0 : i64, scratch_operands = 1 : i64, tpu.core_type = #tpu.core_type<tc>, window_params = [{transform_indices = @transform_0, window_bounds = array<i64: 384, 64>}, {transform_indices = @transform_1, window_bounds = array<i64: 384, 64>}, {pipeline_mode = #tpu.pipeline_mode<synchronous>, transform_indices = @transform_2, window_bounds = array<i64: 64, 128>}, {pipeline_mode = #tpu.pipeline_mode<synchronous>, transform_indices = @transform_3, window_bounds = array<i64: 1, 128>}, {pipeline_mode = #tpu.pipeline_mode<synchronous>, transform_indices = @transform_4, window_bounds = array<i64: 1, 128>}, {transform_indices = @transform_5, window_bounds = array<i64: 384, 384>}, {transform_indices = @transform_6, window_bounds = array<i64: 384, 128>}]} {
    %c0_i32 = arith.constant 0 : i32
    %0 = arith.cmpi eq, %arg1, %c0_i32 : i32
    %1 = arith.extui %0 : i1 to i32
    %c0_i32_0 = arith.constant 0 : i32
    %2 = arith.cmpi ne, %1, %c0_i32_0 : i32
    scf.if %2 {
      %c0_13 = arith.constant 0 : index
      %c0_14 = arith.constant 0 : index
      %16 = vector.load %arg3[%c0_13, %c0_14] : memref<384x64xf32, #tpu.memory_space<vmem>>, vector<384x64xf32>
      %c0_15 = arith.constant 0 : index
      %c0_16 = arith.constant 0 : index
      %17 = vector.load %arg4[%c0_15, %c0_16] : memref<64x128xf32, #tpu.memory_space<vmem>>, vector<64x128xf32>
      %cst_17 = arith.constant dense<0.000000e+00> : vector<384x128xf32>
      %18 = tpu.matmul %16, %17, %cst_17 {dimension_numbers = #tpu.dot_dimension_numbers<[1], [0], [0], [1], [0, 0, 1, 1], [], []>} : vector<384x64xf32>, vector<64x128xf32>, vector<384x128xf32> -> vector<384x128xf32>
      %c0_18 = arith.constant 0 : index
      %c0_19 = arith.constant 0 : index
      %19 = vector.load %arg5[%c0_18, %c0_19] : memref<1x128xf32, #tpu.memory_space<vmem>>, vector<1x128xf32>
      %20 = vector.broadcast %19 : vector<1x128xf32> to vector<384x128xf32>
      %21 = arith.mulf %18, %20 : vector<384x128xf32>
      %c0_20 = arith.constant 0 : index
      %c0_21 = arith.constant 0 : index
      %22 = vector.load %arg9[%c0_20, %c0_21] : memref<384x128xf32, #tpu.memory_space<vmem>>, vector<384x128xf32>
      tpu.vector_store %arg9[%c0_20, %c0_21], %21 {strides = array<i32>} : memref<384x128xf32, #tpu.memory_space<vmem>>, vector<384x128xf32>,
    } else {
    }
    %c0 = arith.constant 0 : index
    %c0_1 = arith.constant 0 : index
    %3 = vector.load %arg2[%c0, %c0_1] : memref<384x64xf32, #tpu.memory_space<vmem>>, vector<384x64xf32>
    %c0_2 = arith.constant 0 : index
    %c0_3 = arith.constant 0 : index
    %4 = vector.load %arg4[%c0_2, %c0_3] : memref<64x128xf32, #tpu.memory_space<vmem>>, vector<64x128xf32>
    %cst = arith.constant dense<0.000000e+00> : vector<384x128xf32>
    %5 = tpu.matmul %3, %4, %cst {dimension_numbers = #tpu.dot_dimension_numbers<[1], [0], [0], [1], [0, 0, 1, 1], [], []>} : vector<384x64xf32>, vector<64x128xf32>, vector<384x128xf32> -> vector<384x128xf32>
    %c0_4 = arith.constant 0 : index
    %c0_5 = arith.constant 0 : index
    %6 = vector.load %arg7[%c0_4, %c0_5] : memref<384x384xi8, #tpu.memory_space<vmem>>, vector<384x384xi8>
    %7 = arith.sitofp %6 : vector<384x384xi8> to vector<384x384xbf16>
    %8 = arith.truncf %5 : vector<384x128xf32> to vector<384x128xbf16>
    %c0_6 = arith.constant 0 : index
    %c0_7 = arith.constant 0 : index
    %9 = vector.load %arg9[%c0_6, %c0_7] : memref<384x128xf32, #tpu.memory_space<vmem>>, vector<384x128xf32>
    %cst_8 = arith.constant dense<0.000000e+00> : vector<384x128xf32>
    %10 = tpu.matmul %7, %8, %cst_8 {dimension_numbers = #tpu.dot_dimension_numbers<[1], [0], [0], [1], [0, 0, 1, 1], [], []>} : vector<384x384xbf16>, vector<384x128xbf16>, vector<384x128xf32> -> vector<384x128xf32>
    %11 = arith.addf %9, %10 : vector<384x128xf32>
    %c0_9 = arith.constant 0 : index
    %c0_10 = arith.constant 0 : index
    %12 = vector.load %arg9[%c0_9, %c0_10] : memref<384x128xf32, #tpu.memory_space<vmem>>, vector<384x128xf32>
    tpu.vector_store %arg9[%c0_9, %c0_10], %11 {strides = array<i32>} : memref<384x128xf32, #tpu.memory_space<vmem>>, vector<384x128xf32>,
    %c0_i32_11 = arith.constant 0 : i32
    %13 = arith.cmpi eq, %arg1, %c0_i32_11 : i32
    %14 = arith.extui %13 : i1 to i32
    %c0_i32_12 = arith.constant 0 : i32
    %15 = arith.cmpi ne, %14, %c0_i32_12 : i32
    scf.if %15 {
      %c0_13 = arith.constant 0 : index
      %c0_14 = arith.constant 0 : index
      %16 = vector.load %arg9[%c0_13, %c0_14] : memref<384x128xf32, #tpu.memory_space<vmem>>, vector<384x128xf32>
      %c0_15 = arith.constant 0 : index
      %c0_16 = arith.constant 0 : index
      %17 = vector.load %arg6[%c0_15, %c0_16] : memref<1x128xf32, #tpu.memory_space<vmem>>, vector<1x128xf32>
      %18 = vector.broadcast %17 : vector<1x128xf32> to vector<384x128xf32>
      %19 = arith.addf %16, %18 : vector<384x128xf32>
      %cst_17 = arith.constant 0.000000e+00 : f32
      %20 = vector.broadcast %cst_17 : f32 to vector<384x128xf32>
      %21 = arith.cmpf ogt, %19, %20 : vector<384x128xf32>
      %cst_18 = arith.constant 0.000000e+00 : f32
      %22 = vector.broadcast %cst_18 : f32 to vector<384x128xf32>
      %23 = arith.minimumf %19, %22 : vector<384x128xf32>
      %24 = math.exp %23 : vector<384x128xf32>
      %cst_19 = arith.constant 1.000000e+00 : f32
      %25 = vector.broadcast %cst_19 : f32 to vector<384x128xf32>
      %26 = arith.subf %24, %25 : vector<384x128xf32>
      %cst_20 = arith.constant 1.67326319 : f32
      %27 = vector.broadcast %cst_20 : f32 to vector<384x128xf32>
      %28 = arith.mulf %27, %26 : vector<384x128xf32>
      %29 = arith.select %21, %19, %28 : vector<384x128xi1>, vector<384x128xf32>
      %cst_21 = arith.constant 1.05070102 : f32
      %30 = vector.broadcast %cst_21 : f32 to vector<384x128xf32>
      %31 = arith.mulf %30, %29 : vector<384x128xf32>
      %c0_22 = arith.constant 0 : index
      %c0_23 = arith.constant 0 : index
      %32 = vector.load %arg8[%c0_22, %c0_23] : memref<384x128xf32, #tpu.memory_space<vmem>>, vector<384x128xf32>
      tpu.vector_store %arg8[%c0_22, %c0_23], %31 {strides = array<i32>} : memref<384x128xf32, #tpu.memory_space<vmem>>, vector<384x128xf32>,
    } else {
    }
    return
  }
  func.func @transform_0(%arg0: i32, %arg1: i32) -> (i32, i32) {
    %c0_i32 = arith.constant 0 : i32
    %c0_i32_0 = arith.constant 0 : i32
    return %arg1, %c0_i32 : i32, i32
  }
  func.func @transform_1(%arg0: i32, %arg1: i32) -> (i32, i32) {
    %c0_i32 = arith.constant 0 : i32
    %c0_i32_0 = arith.constant 0 : i32
    return %arg0, %c0_i32 : i32, i32
  }
  func.func @transform_2(%arg0: i32, %arg1: i32) -> (i32, i32) {
    %c0_i32 = arith.constant 0 : i32
    %c0_i32_0 = arith.constant 0 : i32
    %c0_i32_1 = arith.constant 0 : i32
    return %c0_i32, %c0_i32_0 : i32, i32
  }
  func.func @transform_3(%arg0: i32, %arg1: i32) -> (i32, i32) {
    %c0_i32 = arith.constant 0 : i32
    %c0_i32_0 = arith.constant 0 : i32
    %c0_i32_1 = arith.constant 0 : i32
    return %c0_i32, %c0_i32_0 : i32, i32
  }
  func.func @transform_4(%arg0: i32, %arg1: i32) -> (i32, i32) {
    %c0_i32 = arith.constant 0 : i32
    %c0_i32_0 = arith.constant 0 : i32
    %c0_i32_1 = arith.constant 0 : i32
    return %c0_i32, %c0_i32_0 : i32, i32
  }
  func.func @transform_5(%arg0: i32, %arg1: i32) -> (i32, i32) {
    %c0_i32 = arith.constant 0 : i32
    return %arg0, %arg1 : i32, i32
  }
  func.func @transform_6(%arg0: i32, %arg1: i32) -> (i32, i32) {
    %c0_i32 = arith.constant 0 : i32
    %c0_i32_0 = arith.constant 0 : i32
    return %arg0, %c0_i32 : i32, i32
  }
}

</mosaic_0001>

<bundles_post_ra>
// kernel: tpu_custom_call.1
= control target key start
LH: loop header
LB: loop body
LE: loop exit
PB: predicated region body
PF: predicated region fallthrough
CT: control target
= control target key end

     0   :  { %s3817_s0 = inlined_call_operand.vmem [shape: f32[384,64], index: 0, kind: input, shape index: {}]   ;;  %s3818_s1 = inlined_call_operand.vmem [shape: f32[384,64], index: 1, kind: input, shape index: {}]   ;;  %s3819_s2 = inlined_call_operand.vmem [shape: f32[64,128], index: 2, kind: input, shape index: {}]   ;;  %s3820_s3 = inlined_call_operand.vmem [shape: f32[1,128], index: 3, kind: input, shape index: {}]   ;;  %s3821_s4 = inlined_call_operand.vmem [shape: f32[1,128], index: 4, kind: input, shape index: {}]   ;;  %s3822_s5 = inlined_call_operand.vmem [shape: s8[384,384], index: 5, kind: input, shape index: {}]   ;;  %s3823_s6 = inlined_call_operand.hbm [shape: f32[384,128], index: 6, kind: output, shape index: {}]  }
   0x1   :  { %v83_v0 = vld [vmem:[%s3819_s2 + $0x38] sm:$0xff]  ;;  %v82_v1 = vld [vmem:[%s3819_s2 + $0x30] sm:$0xff]  ;;  %v81_v2 = vld [vmem:[%s3819_s2 + $0x28] sm:$0xff] }
   0x2   :  { %237 = vmatpush.msra.mxu0 %v83_v0  ;;  %2500 = vmatpush.msra.mxu3 %v83_v0  ;;  %v80_v3 = vld [vmem:[%s3819_s2 + $0x20] sm:$0xff]  ;;  %v79_v4 = vld [vmem:[%s3819_s2 + $0x18] sm:$0xff] }
   0x3   :  { %699 = vmatpush.msra.mxu1 %v83_v0  ;;  %2508 = vmatpush.msra.mxu2 %v83_v0 }
   0x4   :  { %238 = vmatpush.msra.mxu0 %v82_v1  ;;  %2501 = vmatpush.msra.mxu3 %v82_v1 }
   0x5   :  { %700 = vmatpush.msra.mxu1 %v82_v1  ;;  %2510 = vmatpush.msra.mxu2 %v82_v1 }
   0x6   :  { %239 = vmatpush.msra.mxu0 %v81_v2  ;;  %2502 = vmatpush.msra.mxu3 %v81_v2 }
   0x7   :  { %701 = vmatpush.msra.mxu1 %v81_v2  ;;  %2512 = vmatpush.msra.mxu2 %v81_v2 }
   0x8   :  { %240 = vmatpush.msra.mxu0 %v80_v3  ;;  %2503 = vmatpush.msra.mxu3 %v80_v3 }
   0x9   :  { %11 = vsyncpa [#allocation4], 0  ;;  %702 = vmatpush.msra.mxu1 %v80_v3  ;;  %v78_v5 = vld [vmem:[%s3819_s2 + $0x10] sm:$0xff]  ;;  %2514 = vmatpush.msra.mxu2 %v80_v3  ;;  %v77_v6 = vld [vmem:[%s3819_s2 + $0x8] sm:$0xff]  ;;  %vm84_vm0 = vcmask 523264   ;;  %s2344_s7 = sshll.u32 %s3823_s6, 4  ;;  %s2345_s7 = int_to_ptr.hbm [resolvable:$true] %s2344_s7 }
   0xa   :  { %241 = vmatpush.msra.mxu0 %v79_v4  ;;  %2504 = vmatpush.msra.mxu3 %v79_v4  ;;  %v76_v7 = vld [vmem:[%s3819_s2] sm:$0xff]  ;;  %v74_v9 = vld [vmem:[%s3818_s1 + $0x170] sm:$0xff]  ;;  %v517_v11 = vld [vmem:[%s3817_s0 + $0xd8] sm:$0xff]  ;;  %s2664_s8 = smov 128   ;;  %s2665_s9 = smov 8  }
   0xb   :  { %703 = vmatpush.msra.mxu1 %v79_v4  ;;  %2516 = vmatpush.msra.mxu2 %v79_v4  ;;  %v28_v8 = vld [vmem:[%s3818_s1] sm:$0xff]  ;;  %v29_v12 = vld [vmem:[%s3818_s1 + $0x8] sm:$0xff]  ;;  %v75_v13 = vld [vmem:[%s3818_s1 + $0x178] sm:$0xff] }
   0xc   :  { %242 = vmatpush.msra.mxu0 %v78_v5  ;;  %2505 = vmatpush.msra.mxu3 %v78_v5  ;;  %v490_v10 = vld [vmem:[%s3817_s0] sm:$0xff]  ;;  %v491_v14 = vld [vmem:[%s3817_s0 + $0x8] sm:$0xff]  ;;  %v30_v16 = vld [vmem:[%s3818_s1 + $0x10] sm:$0xff] }
   0xd   :  { %704 = vmatpush.msra.mxu1 %v78_v5  ;;  %2518 = vmatpush.msra.mxu2 %v78_v5  ;;  %v518_v15 = vld [vmem:[%s3817_s0 + $0xe0] sm:$0xff]  ;;  %v492_v17 = vld [vmem:[%s3817_s0 + $0x10] sm:$0xff]  ;;  %v529_v18 = vld [vmem:[%s3817_s0 + $0x138] sm:$0xff] }
   0xe   :  { %243 = vmatpush.msra.mxu0 %v77_v6  ;;  %2506 = vmatpush.msra.mxu3 %v77_v6  ;;  %v519_v19 = vld [vmem:[%s3817_s0 + $0xe8] sm:$0xff]  ;;  %v31_v20 = vld [vmem:[%s3818_s1 + $0x18] sm:$0xff]  ;;  %v530_v22 = vld [vmem:[%s3817_s0 + $0x140] sm:$0xff] }
   0xf   :  { %705 = vmatpush.msra.mxu1 %v77_v6  ;;  %2520 = vmatpush.msra.mxu2 %v77_v6  ;;  %v493_v21 = vld [vmem:[%s3817_s0 + $0x18] sm:$0xff]  ;;  %v520_v23 = vld [vmem:[%s3817_s0 + $0xf0] sm:$0xff]  ;;  %v32_v24 = vld [vmem:[%s3818_s1 + $0x20] sm:$0xff] }
  0x10   :  { %244 = vmatpush.msra.mxu0 %v76_v7  ;;  %2507 = vmatpush.msra.mxu3 %v76_v7  ;;  %v494_v25 = vld [vmem:[%s3817_s0 + $0x20] sm:$0xff]  ;;  %v531_v26 = vld [vmem:[%s3817_s0 + $0x148] sm:$0xff]  ;;  %v521_v27 = vld [vmem:[%s3817_s0 + $0xf8] sm:$0xff] }
  0x11   :  { %706 = vmatpush.msra.mxu1 %v76_v7  ;;  %2356 = vmatmul.msk.f32.vlgmr.msra.gmra.mxu0 %vm84_vm0, %v28_v8  ;;  %v33_v28 = vld [vmem:[%s3818_s1 + $0x28] sm:$0xff]  ;;  %v532_v30 = vld [vmem:[%s3817_s0 + $0x150] sm:$0xff]  ;;  %v522_v31 = vld [vmem:[%s3817_s0 + $0x100] sm:$0xff] }
  0x12   :  { %2402 = vmatmul.msk.f32.vlgmr.msra.gmra.mxu3 %vm84_vm0, %v74_v9  ;;  %2404 = vmatmul.msk.f32.vlgmr.msra.gmra.mxu1 %vm84_vm0, %v490_v10  ;;  %v495_v29 = vld [vmem:[%s3817_s0 + $0x28] sm:$0xff]  ;;  %v34_v32 = vld [vmem:[%s3818_s1 + $0x30] sm:$0xff]  ;;  %v533_v34 = vld [vmem:[%s3817_s0 + $0x158] sm:$0xff] }
  0x13   :  { %2509 = vmatpush.msrb.mxu3 %v83_v0  ;;  %2522 = vmatpush.msra.mxu2 %v76_v7  ;;  %v496_v33 = vld [vmem:[%s3817_s0 + $0x30] sm:$0xff]  ;;  %v523_v35 = vld [vmem:[%s3817_s0 + $0x108] sm:$0xff]  ;;  %v35_v36 = vld [vmem:[%s3818_s1 + $0x38] sm:$0xff] }
  0x14   :  { %2431 = vmatmul.msk.f32.vlgmr.msra.gmra.mxu2 %vm84_vm0, %v517_v11  ;;  %v497_v37 = vld [vmem:[%s3817_s0 + $0x38] sm:$0xff]  ;;  %v534_v38 = vld [vmem:[%s3817_s0 + $0x160] sm:$0xff]  ;;  %v524_v39 = vld [vmem:[%s3817_s0 + $0x110] sm:$0xff] }
  0x15   :  { %2511 = vmatpush.msrb.mxu3 %v82_v1  ;;  %v36_v40 = vld [vmem:[%s3818_s1 + $0x40] sm:$0xff]  ;;  %v535_v42 = vld [vmem:[%s3817_s0 + $0x168] sm:$0xff]  ;;  %v525_v43 = vld [vmem:[%s3817_s0 + $0x118] sm:$0xff] }
  0x16   :  { %v498_v41 = vld [vmem:[%s3817_s0 + $0x40] sm:$0xff]  ;;  %v37_v44 = vld [vmem:[%s3818_s1 + $0x48] sm:$0xff]  ;;  %v536_v46 = vld [vmem:[%s3817_s0 + $0x170] sm:$0xff] }
  0x17   :  { %2513 = vmatpush.msrb.mxu3 %v81_v2  ;;  %v499_v45 = vld [vmem:[%s3817_s0 + $0x48] sm:$0xff]  ;;  %v526_v47 = vld [vmem:[%s3817_s0 + $0x120] sm:$0xff]  ;;  %v38_v48 = vld [vmem:[%s3818_s1 + $0x50] sm:$0xff] }
  0x18   :  { %v500_v49 = vld [vmem:[%s3817_s0 + $0x50] sm:$0xff]  ;;  %v537_v50 = vld [vmem:[%s3817_s0 + $0x178] sm:$0xff]  ;;  %v527_v51 = vld [vmem:[%s3817_s0 + $0x128] sm:$0xff] }
  0x19   :  { %2515 = vmatpush.msrb.mxu3 %v80_v3  ;;  %2357 = vmatmul.msk.f32.gmra.mxu0 %vm84_vm0, %v29_v12  ;;  %v39_v52 = vld [vmem:[%s3818_s1 + $0x58] sm:$0xff]  ;;  %v528_v54 = vld [vmem:[%s3817_s0 + $0x130] sm:$0xff]  ;;  %v40_v55 = vld [vmem:[%s3818_s1 + $0x60] sm:$0xff] }
  0x1a   :  { %2403 = vmatmul.msk.f32.gmra.mxu3 %vm84_vm0, %v75_v13  ;;  %2405 = vmatmul.msk.f32.gmra.mxu1 %vm84_vm0, %v491_v14  ;;  %v501_v53 = vld [vmem:[%s3817_s0 + $0x58] sm:$0xff]  ;;  %v502_v56 = vld [vmem:[%s3817_s0 + $0x60] sm:$0xff]  ;;  %v41_v57 = vld [vmem:[%s3818_s1 + $0x68] sm:$0xff] }
  0x1b   :  { %2517 = vmatpush.msrb.mxu3 %v79_v4  ;;  %v503_v58 = vld [vmem:[%s3817_s0 + $0x68] sm:$0xff]  ;;  %v42_v59 = vld [vmem:[%s3818_s1 + $0x70] sm:$0xff]  ;;  %v43_v61 = vld [vmem:[%s3818_s1 + $0x78] sm:$0xff] }
  0x1c   :  { %2432 = vmatmul.msk.f32.gmra.mxu2 %vm84_vm0, %v518_v15  ;;  %v504_v60 = vld [vmem:[%s3817_s0 + $0x70] sm:$0xff]  ;;  %v505_v62 = vld [vmem:[%s3817_s0 + $0x78] sm:$0xff]  ;;  %v44_v0 = vld [vmem:[%s3818_s1 + $0x80] sm:$0xff] }
  0x1d   :  { %2519 = vmatpush.msrb.mxu3 %v78_v5  ;;  %v506_v2 = vld [vmem:[%s3817_s0 + $0x80] sm:$0xff]  ;;  %v45_v5 = vld [vmem:[%s3818_s1 + $0x88] sm:$0xff]  ;;  %v46_v11 = vld [vmem:[%s3818_s1 + $0x90] sm:$0xff] }
  0x1e   :  { %v508_v13 = vld [vmem:[%s3817_s0 + $0x90] sm:$0xff] }
  0x1f   :  { %2521 = vmatpush.msrb.mxu3 %v77_v6 }
  0x21   :  { %2523 = vmatpush.msrb.mxu3 %v76_v7  ;;  %2358 = vmatmul.msk.f32.gmra.mxu0 %vm84_vm0, %v30_v16  ;;  %v507_v7 = vld [vmem:[%s3817_s0 + $0x88] sm:$0xff] }
  0x22   :  { %2406 = vmatmul.msk.f32.gmra.mxu1 %vm84_vm0, %v492_v17  ;;  %2443 = vmatmul.msk.f32.vlgmr.msrb.gmra.mxu3 %vm84_vm0, %v529_v18  ;;  %v47_v17 = vld [vmem:[%s3818_s1 + $0x98] sm:$0xff] }
  0x24   :  { %2433 = vmatmul.msk.f32.gmra.mxu2 %vm84_vm0, %v519_v19  ;;  %v509_v19 = vld [vmem:[%s3817_s0 + $0x98] sm:$0xff] }
  0x29   :  { %2359 = vmatmul.msk.f32.gmra.mxu0 %vm84_vm0, %v31_v20 }
  0x2a   :  { %2407 = vmatmul.msk.f32.gmra.mxu1 %vm84_vm0, %v493_v21  ;;  %2444 = vmatmul.msk.f32.gmra.mxu3 %vm84_vm0, %v530_v22 }
  0x2c   :  { %2434 = vmatmul.msk.f32.gmra.mxu2 %vm84_vm0, %v520_v23 }
  0x31   :  { %2360 = vmatmul.msk.f32.gmra.mxu0 %vm84_vm0, %v32_v24  ;;  %v48_v24 = vld [vmem:[%s3818_s1 + $0xa0] sm:$0xff] }
  0x32   :  { %2408 = vmatmul.msk.f32.gmra.mxu1 %vm84_vm0, %v494_v25  ;;  %2445 = vmatmul.msk.f32.gmra.mxu3 %vm84_vm0, %v531_v26  ;;  %v510_v26 = vld [vmem:[%s3817_s0 + $0xa0] sm:$0xff] }
  0x34   :  { %2435 = vmatmul.msk.f32.gmra.mxu2 %vm84_vm0, %v521_v27 }
  0x39   :  { %2361 = vmatmul.msk.f32.gmra.mxu0 %vm84_vm0, %v33_v28 }
  0x3a   :  { %2409 = vmatmul.msk.f32.gmra.mxu1 %vm84_vm0, %v495_v29  ;;  %2446 = vmatmul.msk.f32.gmra.mxu3 %vm84_vm0, %v532_v30  ;;  %v49_v30 = vld [vmem:[%s3818_s1 + $0xa8] sm:$0xff] }
  0x3c   :  { %2436 = vmatmul.msk.f32.gmra.mxu2 %vm84_vm0, %v522_v31 }
  0x41   :  { %2362 = vmatmul.msk.f32.gmra.mxu0 %vm84_vm0, %v34_v32  ;;  %v511_v32 = vld [vmem:[%s3817_s0 + $0xa8] sm:$0xff] }
  0x42   :  { %2410 = vmatmul.msk.f32.gmra.mxu1 %vm84_vm0, %v496_v33  ;;  %2447 = vmatmul.msk.f32.gmra.mxu3 %vm84_vm0, %v533_v34 }
  0x44   :  { %2437 = vmatmul.msk.f32.gmra.mxu2 %vm84_vm0, %v523_v35 }
  0x49   :  { %2363 = vmatmul.msk.f32.gmra.mxu0 %vm84_vm0, %v35_v36 }
  0x4a   :  { %2411 = vmatmul.msk.f32.gmra.mxu1 %vm84_vm0, %v497_v37  ;;  %2448 = vmatmul.msk.f32.gmra.mxu3 %vm84_vm0, %v534_v38  ;;  %v50_v38 = vld [vmem:[%s3818_s1 + $0xb0] sm:$0xff] }
  0x4c   :  { %2438 = vmatmul.msk.f32.gmra.mxu2 %vm84_vm0, %v524_v39 }
  0x51   :  { %2364 = vmatmul.msk.f32.gmra.mxu0 %vm84_vm0, %v36_v40  ;;  %v512_v40 = vld [vmem:[%s3817_s0 + $0xb0] sm:$0xff] }
  0x52   :  { %2412 = vmatmul.msk.f32.gmra.mxu1 %vm84_vm0, %v498_v41  ;;  %2449 = vmatmul.msk.f32.gmra.mxu3 %vm84_vm0, %v535_v42 }
  0x54   :  { %2439 = vmatmul.msk.f32.gmra.mxu2 %vm84_vm0, %v525_v43 }
  0x59   :  { %2365 = vmatmul.msk.f32.gmra.mxu0 %vm84_vm0, %v37_v44  ;;  %v51_v44 = vld [vmem:[%s3818_s1 + $0xb8] sm:$0xff] }
  0x5a   :  { %2413 = vmatmul.msk.f32.gmra.mxu1 %vm84_vm0, %v499_v45  ;;  %2450 = vmatmul.msk.f32.gmra.mxu3 %vm84_vm0, %v536_v46  ;;  %v513_v46 = vld [vmem:[%s3817_s0 + $0xb8] sm:$0xff] }
  0x5c   :  { %2440 = vmatmul.msk.f32.gmra.mxu2 %vm84_vm0, %v526_v47 }
  0x61   :  { %2366 = vmatmul.msk.f32.gmra.mxu0 %vm84_vm0, %v38_v48 }
  0x62   :  { %2414 = vmatmul.msk.f32.gmra.mxu1 %vm84_vm0, %v500_v49  ;;  %2451 = vmatmul.msk.f32.gmra.mxu3 %vm84_vm0, %v537_v50  ;;  %v52_v50 = vld [vmem:[%s3818_s1 + $0xc0] sm:$0xff] }
  0x64   :  { %2441 = vmatmul.msk.f32.gmra.mxu2 %vm84_vm0, %v527_v51 }
  0x69   :  { %2367 = vmatmul.msk.f32.gmra.mxu0 %vm84_vm0, %v39_v52  ;;  %v514_v52 = vld [vmem:[%s3817_s0 + $0xc0] sm:$0xff] }
  0x6a   :  { %2415 = vmatmul.msk.f32.gmra.mxu1 %vm84_vm0, %v501_v53 }
  0x6c   :  { %2442 = vmatmul.msk.f32.gmra.mxu2 %vm84_vm0, %v528_v54 }
  0x71   :  { %2368 = vmatmul.msk.f32.gmra.mxu0 %vm84_vm0, %v40_v55 }
  0x72   :  { %2416 = vmatmul.msk.f32.gmra.mxu1 %vm84_vm0, %v502_v56  ;;  %v53_v56 = vld [vmem:[%s3818_s1 + $0xc8] sm:$0xff] }
  0x79   :  { %2369 = vmatmul.msk.f32.gmra.mxu0 %vm84_vm0, %v41_v57 }
  0x7a   :  { %2417 = vmatmul.msk.f32.gmra.mxu1 %vm84_vm0, %v503_v58  ;;  %v515_v58 = vld [vmem:[%s3817_s0 + $0xc8] sm:$0xff] }
  0x81   :  { %2370 = vmatmul.msk.f32.gmra.mxu0 %vm84_vm0, %v42_v59 }
  0x82   :  { %2418 = vmatmul.msk.f32.gmra.mxu1 %vm84_vm0, %v504_v60 }
  0x89   :  { %2371 = vmatmul.msk.f32.gmra.mxu0 %vm84_vm0, %v43_v61 }
  0x8a   :  { %2419 = vmatmul.msk.f32.gmra.mxu1 %vm84_vm0, %v505_v62  ;;  %v54_v62 = vld [vmem:[%s3818_s1 + $0xd0] sm:$0xff] }
  0x8e   :  { %v2945_v63 = vpop.f32.mrf.mxu0 }
  0x8f   :  { %v2950_v1 = vpop.f32.mrf.mxu1 }
  0x91   :  { %2372 = vmatmul.msk.f32.gmra.mxu0 %vm84_vm0, %v44_v0 }
  0x92   :  { %2420 = vmatmul.msk.f32.gmra.mxu1 %vm84_vm0, %v506_v2  ;;  %v516_v2 = vld [vmem:[%s3817_s0 + $0xd0] sm:$0xff] }
  0x95   :  { %v2957_v3 = vpop.f32.mrf.mxu3 }
  0x96   :  { %3824 = vst [vmem:[#allocation6_spill] sm:$0xff] %v2957_v3  ;;  %v2959_v4 = vpop.f32.mrf.mxu0 }
  0x97   :  { %v2964_v6 = vpop.f32.mrf.mxu1  ;;  %v2969_v8 = vpop.f32.mrf.mxu2 }
  0x99   :  { %2373 = vmatmul.msk.f32.gmra.mxu0 %vm84_vm0, %v45_v5 }
  0x9a   :  { %2421 = vmatmul.msk.f32.gmra.mxu1 %vm84_vm0, %v507_v7 }
  0x9d   :  { %v2973_v9 = vpop.f32.mrf.mxu3 }
  0x9e   :  { %3825 = vst [vmem:[#allocation7_spill] sm:$0xff] %v2973_v9  ;;  %v2975_v10 = vpop.f32.mrf.mxu0 }
  0x9f   :  { %v2980_v12 = vpop.f32.mrf.mxu1  ;;  %v792_v14 = vpop.f32.mrf.mxu2 }
  0xa1   :  { %2374 = vmatmul.msk.f32.gmra.mxu0 %vm84_vm0, %v46_v11 }
  0xa2   :  { %2422 = vmatmul.msk.f32.gmra.mxu1 %vm84_vm0, %v508_v13 }
  0xa5   :  { %v2987_v15 = vpop.f32.mrf.mxu3 }
  0xa6   :  { %v2989_v16 = vpop.f32.mrf.mxu0 }
  0xa7   :  { %v2994_v18 = vpop.f32.mrf.mxu1  ;;  %v795_v20 = vpop.f32.mrf.mxu2 }
  0xa8   :  { %v1249_v21 = vpack.c.bf16 %v2994_v18, %v2980_v12  ;;  %v1262_v35 = vpack.c.bf16 %v795_v20, %v792_v14  ;;  %v55_v14 = vld [vmem:[%s3818_s1 + $0xd8] sm:$0xff]  ;;  %v64_v12 = vld [vmem:[%s3818_s1 + $0x120] sm:$0xff] }
  0xa9   :  { %2375 = vmatmul.msk.f32.gmra.mxu0 %vm84_vm0, %v47_v17 }
  0xaa   :  { %2423 = vmatmul.msk.f32.gmra.mxu1 %vm84_vm0, %v509_v19 }
  0xad   :  { %v3003_v22 = vpop.f32.mrf.mxu3 }
  0xae   :  { %v3005_v23 = vpop.f32.mrf.mxu0 }
  0xaf   :  { %v3010_v25 = vpop.f32.mrf.mxu1  ;;  %v798_v27 = vpop.f32.mrf.mxu2 }
  0xb1   :  { %2376 = vmatmul.msk.f32.gmra.mxu0 %vm84_vm0, %v48_v24 }
  0xb2   :  { %2424 = vmatmul.msk.f32.gmra.mxu1 %vm84_vm0, %v510_v26 }
  0xb5   :  { %v3017_v28 = vpop.f32.mrf.mxu3 }
  0xb6   :  { %v3019_v29 = vpop.f32.mrf.mxu0 }
  0xb7   :  { %v3024_v31 = vpop.f32.mrf.mxu1  ;;  %v801_v33 = vpop.f32.mrf.mxu2 }
  0xb8   :  { %v1263_v34 = vpack.c.bf16 %v801_v33, %v798_v27  ;;  %v56_v27 = vld [vmem:[%s3818_s1 + $0xe0] sm:$0xff] }
  0xb9   :  { %2377 = vmatmul.msk.f32.gmra.mxu0 %vm84_vm0, %v49_v30 }
  0xba   :  { %2425 = vmatmul.msk.f32.gmra.mxu1 %vm84_vm0, %v511_v32  ;;  %1449 = vmatpush.bf16.msra.mxu3 %v1263_v34  ;;  %v1268_v32 = vpack.c.bf16 %v3017_v28, %v3003_v22 }
  0xbd   :  { %v834_v36 = vpop.f32.mrf.mxu3 }
  0xbe   :  { %v3031_v37 = vpop.f32.mrf.mxu0  ;;  %1450 = vmatpush.bf16.msra.mxu3 %v1262_v35 }
  0xbf   :  { %v3036_v39 = vpop.f32.mrf.mxu1  ;;  %v3041_v41 = vpop.f32.mrf.mxu2 }
  0xc1   :  { %2378 = vmatmul.msk.f32.gmra.mxu0 %vm84_vm0, %v50_v38 }
  0xc2   :  { %2426 = vmatmul.msk.f32.gmra.mxu1 %vm84_vm0, %v512_v40 }
  0xc5   :  { %v837_v42 = vpop.f32.mrf.mxu3 }
  0xc6   :  { %v3045_v43 = vpop.f32.mrf.mxu0  ;;  %v1269_v24 = vpack.c.bf16 %v837_v42, %v834_v36  ;;  %v57_v36 = vld [vmem:[%s3818_s1 + $0xe8] sm:$0xff] }
  0xc7   :  { %v3050_v45 = vpop.f32.mrf.mxu1  ;;  %v3055_v47 = vpop.f32.mrf.mxu2 }
  0xc9   :  { %2379 = vmatmul.msk.f32.gmra.mxu0 %vm84_vm0, %v51_v44  ;;  %v1264_v44 = vpack.c.bf16 %v3055_v47, %v3041_v41  ;;  %v60_v47 = vld [vmem:[%s3818_s1 + $0x100] sm:$0xff] }
  0xca   :  { %2427 = vmatmul.msk.f32.gmra.mxu1 %vm84_vm0, %v513_v46 }
  0xcd   :  { %v840_v48 = vpop.f32.mrf.mxu3 }
  0xce   :  { %v3059_v49 = vpop.f32.mrf.mxu0 }
  0xcf   :  { %v3064_v51 = vpop.f32.mrf.mxu1  ;;  %v810_v53 = vpop.f32.mrf.mxu2 }
  0xd1   :  { %2380 = vmatmul.msk.f32.gmra.mxu0 %vm84_vm0, %v52_v50 }
  0xd2   :  { %2428 = vmatmul.msk.f32.gmra.mxu1 %vm84_vm0, %v514_v52 }
  0xd5   :  { %v843_v54 = vpop.f32.mrf.mxu3 }
  0xd6   :  { %v3071_v55 = vpop.f32.mrf.mxu0  ;;  %v1270_v20 = vpack.c.bf16 %v843_v54, %v840_v48  ;;  %v59_v48 = vld [vmem:[%s3818_s1 + $0xf8] sm:$0xff] }
  0xd7   :  { %v3076_v57 = vpop.f32.mrf.mxu1  ;;  %v813_v59 = vpop.f32.mrf.mxu2 }
  0xd8   :  { %v1265_v22 = vpack.c.bf16 %v813_v59, %v810_v53 }
  0xd9   :  { %2381 = vmatmul.msk.f32.gmra.mxu0 %vm84_vm0, %v53_v56 }
  0xda   :  { %2429 = vmatmul.msk.f32.gmra.mxu1 %vm84_vm0, %v515_v58  ;;  %v1252_v58 = vpack.c.bf16 %v3076_v57, %v3064_v51  ;;  %v62_v57 = vld [vmem:[%s3818_s1 + $0x110] sm:$0xff] }
  0xdd   :  { %v846_v60 = vpop.f32.mrf.mxu3 }
  0xde   :  { %v3083_v61 = vpop.f32.mrf.mxu0 }
  0xdf   :  { %v738_v0 = vpop.f32.mrf.mxu1  ;;  %v816_v5 = vpop.f32.mrf.mxu2 }
  0xe1   :  { %2382 = vmatmul.msk.f32.gmra.mxu0 %vm84_vm0, %v54_v62 }
  0xe2   :  { %2430 = vmatmul.msk.f32.gmra.mxu1 %vm84_vm0, %v516_v2  ;;  %v1251_v2 = vpack.c.bf16 %v3050_v45, %v3036_v39  ;;  %v1248_v39 = vpack.c.bf16 %v2964_v6, %v2950_v1  ;;  %v65_v6 = vld [vmem:[%s3818_s1 + $0x128] sm:$0xff] }
  0xe5   :  { %v849_v7 = vpop.f32.mrf.mxu3 }
  0xe6   :  { %v3093_v11 = vpop.f32.mrf.mxu0  ;;  %v1271_v13 = vpack.c.bf16 %v849_v7, %v846_v60  ;;  %v61_v60 = vld [vmem:[%s3818_s1 + $0x108] sm:$0xff] }
  0xe7   :  { %v741_v17 = vpop.f32.mrf.mxu1  ;;  %v819_v19 = vpop.f32.mrf.mxu2 }
  0xe8   :  { %1578 = vmatpush.bf16.msrb.mxu0 %v1271_v13  ;;  %2524 = vmatpush.bf16.msrb.mxu1 %v1271_v13  ;;  %v1266_v40 = vpack.c.bf16 %v819_v19, %v816_v5  ;;  %v1253_v56 = vpack.c.bf16 %v741_v17, %v738_v0  ;;  %v1250_v0 = vpack.c.bf16 %v3024_v31, %v3010_v25  ;;  %v63_v31 = vld [vmem:[%s3818_s1 + $0x118] sm:$0xff] }
  0xe9   :  { %2383 = vmatmul.msk.f32.gmra.mxu0 %vm84_vm0, %v55_v14  ;;  %v66_v14 = vld [vmem:[%s3818_s1 + $0x130] sm:$0xff] }
  0xec   :  { %1579 = vmatpush.bf16.msrb.mxu0 %v1270_v20  ;;  %2525 = vmatpush.bf16.msrb.mxu1 %v1270_v20  ;;  %v67_v20 = vld [vmem:[%s3818_s1 + $0x138] sm:$0xff] }
  0xee   :  { %v3099_v26 = vpop.f32.mrf.mxu0 }
  0xef   :  { %v744_v30 = vpop.f32.mrf.mxu1  ;;  %v822_v33 = vpop.f32.mrf.mxu2 }
  0xf0   :  { %1580 = vmatpush.bf16.msrb.mxu0 %v1269_v24  ;;  %2526 = vmatpush.bf16.msrb.mxu1 %v1269_v24  ;;  %v1267_v34 = vpack.c.bf16 %v2987_v15, %v822_v33  ;;  %v58_v15 = vld [vmem:[%s3818_s1 + $0xf0] sm:$0xff] }
  0xf1   :  { %2384 = vmatmul.msk.f32.gmra.mxu0 %vm84_vm0, %v56_v27  ;;  %v852_v27 = vld [vmem:[%s3822_s5] sm:$0xff] }
  0xf4   :  { %1581 = vmatpush.bf16.msrb.mxu0 %v1268_v32  ;;  %2527 = vmatpush.bf16.msrb.mxu1 %v1268_v32  ;;  %v891_v32 = vunpack.c.1.s8 %v852_v27 }
  0xf6   :  { %v3108_v35 = vpop.f32.mrf.mxu0 }
  0xf7   :  { %v747_v38 = vpop.f32.mrf.mxu1 }
  0xf8   :  { %1582 = vmatpush.bf16.msrb.mxu0 %v1267_v34  ;;  %2528 = vmatpush.bf16.msrb.mxu1 %v1267_v34  ;;  %v1254_v53 = vpack.c.bf16 %v747_v38, %v744_v30  ;;  %v888_v30 = vunpack.c.0.s8 %v852_v27  ;;  %v1035_v34 = vcvt.s32.f32 %v891_v32  ;;  %v68_v38 = vld [vmem:[%s3818_s1 + $0x140] sm:$0xff] }
  0xf9   :  { %2385 = vmatmul.msk.f32.gmra.mxu0 %vm84_vm0, %v57_v36 }
  0xfa   :  { %v1032_v33 = vcvt.s32.f32 %v888_v30 }
  0xfc   :  { %1583 = vmatpush.bf16.msrb.mxu0 %v1266_v40  ;;  %2529 = vmatpush.bf16.msrb.mxu1 %v1266_v40 }
  0xfe   :  { %v3114_v28 = vpop.f32.mrf.mxu0 }
  0xff   :  { %v750_v42 = vpop.f32.mrf.mxu1 }
 0x100   :  { %1584 = vmatpush.bf16.msrb.mxu0 %v1265_v22  ;;  %2530 = vmatpush.bf16.msrb.mxu1 %v1265_v22  ;;  %v1176_v22 = vpack.c.bf16 %v1035_v34, %v1032_v33 }
 0x101   :  { %2386 = vmatmul.msk.f32.gmra.mxu0 %vm84_vm0, %v58_v15 }
 0x104   :  { %1585 = vmatpush.bf16.msrb.mxu0 %v1264_v44  ;;  %2531 = vmatpush.bf16.msrb.mxu1 %v1264_v44 }
 0x106   :  { %v3122_v46 = vpop.f32.mrf.mxu0 }
 0x107   :  { %v753_v50 = vpop.f32.mrf.mxu1 }
 0x108   :  { %v1255_v52 = vpack.c.bf16 %v753_v50, %v750_v42  ;;  %v69_v42 = vld [vmem:[%s3818_s1 + $0x148] sm:$0xff]  ;;  %v897_v50 = vunpack.c.3.s8 %v852_v27 }
 0x109   :  { %2387 = vmatmul.msk.f32.gmra.mxu0 %vm84_vm0, %v59_v48  ;;  %v894_v48 = vunpack.c.2.s8 %v852_v27 }
 0x10a   :  { %1320 = vmatpush.bf16.msrb.mxu2 %v1255_v52 }
 0x10b   :  { %v1038_v52 = vcvt.s32.f32 %v894_v48 }
 0x10e   :  { %1321 = vmatpush.bf16.msrb.mxu2 %v1254_v53  ;;  %v3128_v41 = vpop.f32.mrf.mxu0  ;;  %v1041_v53 = vcvt.s32.f32 %v897_v50 }
 0x10f   :  { %v3133_v54 = vpop.f32.mrf.mxu1 }
 0x111   :  { %2388 = vmatmul.msk.f32.gmra.mxu0 %vm84_vm0, %v60_v47 }
 0x112   :  { %1322 = vmatpush.bf16.msrb.mxu2 %v1253_v56  ;;  %v70_v56 = vld [vmem:[%s3818_s1 + $0x150] sm:$0xff] }
 0x116   :  { %1323 = vmatpush.bf16.msrb.mxu2 %v1252_v58  ;;  %v3138_v59 = vpop.f32.mrf.mxu0 }
 0x117   :  { %v3143_v62 = vpop.f32.mrf.mxu1 }
 0x119   :  { %2389 = vmatmul.msk.f32.gmra.mxu0 %vm84_vm0, %v61_v60  ;;  %v1179_v60 = vpack.c.bf16 %v1041_v53, %v1038_v52 }
 0x11a   :  { %1324 = vmatpush.bf16.msrb.mxu2 %v1251_v2 }
 0x11e   :  { %1325 = vmatpush.bf16.msrb.mxu2 %v1250_v0  ;;  %v3150_v51 = vpop.f32.mrf.mxu0 }
 0x11f   :  { %v3155_v5 = vpop.f32.mrf.mxu1 }
 0x121   :  { %2390 = vmatmul.msk.f32.gmra.mxu0 %vm84_vm0, %v62_v57 }
 0x122   :  { %1326 = vmatpush.bf16.msrb.mxu2 %v1249_v21 }
 0x126   :  { %1327 = vmatpush.bf16.msrb.mxu2 %v1248_v39  ;;  %v3163_v25 = vpop.f32.mrf.mxu0  ;;  %v71_v39 = vld [vmem:[%s3818_s1 + $0x158] sm:$0xff] }
 0x127   :  { %v3168_v45 = vpop.f32.mrf.mxu1 }
 0x129   :  { %2391 = vmatmul.msk.f32.gmra.mxu0 %vm84_vm0, %v63_v31  ;;  %1328 = vmatmul.bf16.vlgmr.msrb.gmra.mxu2 %v1176_v22 }
 0x12e   :  { %v3171_v7 = vpop.f32.mrf.mxu0 }
 0x12f   :  { %v768_v18 = vpop.f32.mrf.mxu1 }
 0x131   :  { %2392 = vmatmul.msk.f32.gmra.mxu0 %vm84_vm0, %v64_v12  ;;  %v855_v12 = vld [vmem:[%s3822_s5 + $0x18] sm:$0xff] }
 0x132   :  { %v906_v53 = vunpack.c.2.s8 %v855_v12 }
 0x136   :  { %v3177_v1 = vpop.f32.mrf.mxu0 }
 0x137   :  { %v771_v21 = vpop.f32.mrf.mxu1 }
 0x139   :  { %2393 = vmatmul.msk.f32.gmra.mxu0 %vm84_vm0, %v65_v6  ;;  %1333 = vmatmul.bf16.gmra.mxu2 %v1179_v60  ;;  %v900_v6 = vunpack.c.0.s8 %v855_v12 }
 0x13b   :  { %v1044_v32 = vcvt.s32.f32 %v900_v6 }
 0x13e   :  { %v3183_v13 = vpop.f32.mrf.mxu0 }
 0x13f   :  { %v774_v17 = vpop.f32.mrf.mxu1 }
 0x141   :  { %2394 = vmatmul.msk.f32.gmra.mxu0 %vm84_vm0, %v66_v14  ;;  %v903_v14 = vunpack.c.1.s8 %v855_v12 }
 0x143   :  { %v1047_v33 = vcvt.s32.f32 %v903_v14 }
 0x145   :  { %v1182_v34 = vpack.c.bf16 %v1047_v33, %v1044_v32 }
 0x146   :  { %v3189_v19 = vpop.f32.mrf.mxu0 }
 0x147   :  { %v777_v24 = vpop.f32.mrf.mxu1 }
 0x148   :  { %v1259_v31 = vpack.c.bf16 %v777_v24, %v774_v17  ;;  %v72_v24 = vld [vmem:[%s3818_s1 + $0x160] sm:$0xff] }
 0x149   :  { %2395 = vmatmul.msk.f32.gmra.mxu0 %vm84_vm0, %v67_v20  ;;  %v1258_v20 = vpack.c.bf16 %v771_v21, %v768_v18  ;;  %v854_v18 = vld [vmem:[%s3822_s5 + $0x10] sm:$0xff]  ;;  %1338 = vmatmul.bf16.gmra.mxu2 %v1182_v34  ;;  %v1256_v21 = vpack.c.bf16 %v3143_v62, %v3133_v54  ;;  %v1050_v62 = vcvt.s32.f32 %v906_v53 }
 0x14a   :  { %v896_v14 = vunpack.c.2.s8 %v854_v18 }
 0x14c   :  { %v1040_v32 = vcvt.s32.f32 %v896_v14 }
 0x14e   :  { %v3198_v36 = vpop.f32.mrf.mxu0 }
 0x14f   :  { %v780_v40 = vpop.f32.mrf.mxu1 }
 0x151   :  { %2396 = vmatmul.msk.f32.gmra.mxu0 %vm84_vm0, %v68_v38  ;;  %v1257_v38 = vpack.c.bf16 %v3168_v45, %v3155_v5  ;;  %v73_v5 = vld [vmem:[%s3818_s1 + $0x168] sm:$0xff] }
 0x156   :  { %v3204_v15 = vpop.f32.mrf.mxu0 }
 0x157   :  { %v783_v44 = vpop.f32.mrf.mxu1 }
 0x158   :  { %v1260_v0 = vpack.c.bf16 %v783_v44, %v780_v40  ;;  %v893_v44 = vunpack.c.1.s8 %v854_v18 }
 0x159   :  { %2397 = vmatmul.msk.f32.gmra.mxu0 %vm84_vm0, %v69_v42  ;;  %v890_v42 = vunpack.c.0.s8 %v854_v18 }
 0x15a   :  { %v1037_v52 = vcvt.s32.f32 %v893_v44 }
 0x15b   :  { %v1034_v45 = vcvt.s32.f32 %v890_v42 }
 0x15e   :  { %v3210_v47 = vpop.f32.mrf.mxu0 }
 0x15f   :  { %v786_v58 = vpop.f32.mrf.mxu1 }
 0x160   :  { %v1261_v2 = vpack.c.bf16 %v2969_v8, %v786_v58  ;;  %v853_v8 = vld [vmem:[%s3822_s5 + $0x8] sm:$0xff]  ;;  %v1178_v58 = vpack.c.bf16 %v1037_v52, %v1034_v45 }
 0x161   :  { %2398 = vmatmul.msk.f32.gmra.mxu0 %vm84_vm0, %v70_v56  ;;  %v889_v27 = vunpack.c.0.s8 %v853_v8  ;;  %v892_v30 = vunpack.c.1.s8 %v853_v8  ;;  %v909_v56 = vunpack.c.3.s8 %v855_v12  ;;  %v895_v60 = vunpack.c.2.s8 %v853_v8  ;;  %v858_v12 = vld [vmem:[%s3822_s5 + $0x30] sm:$0xff]  ;;  %v857_v45 = vld [vmem:[%s3822_s5 + $0x28] sm:$0xff] }
 0x162   :  { %1451 = vmatpush.bf16.msra.mxu3 %v1261_v2  ;;  %v898_v54 = vunpack.c.3.s8 %v853_v8  ;;  %v856_v8 = vld [vmem:[%s3822_s5 + $0x20] sm:$0xff]  ;;  %v915_v34 = vunpack.c.1.s8 %v858_v12  ;;  %v902_v52 = vunpack.c.0.s8 %v857_v45  ;;  %v905_v53 = vunpack.c.1.s8 %v857_v45 }
 0x163   :  { %v1033_v40 = vcvt.s32.f32 %v889_v27  ;;  %v1036_v22 = vcvt.s32.f32 %v892_v30  ;;  %v1053_v2 = vcvt.s32.f32 %v909_v56 }
 0x164   :  { %v1042_v6 = vcvt.s32.f32 %v898_v54  ;;  %v1049_v54 = vcvt.s32.f32 %v905_v53 }
 0x165   :  { %v1177_v48 = vpack.c.bf16 %v1036_v22, %v1033_v40  ;;  %v901_v40 = vunpack.c.0.s8 %v856_v8  ;;  %v904_v22 = vunpack.c.1.s8 %v856_v8 }
 0x166   :  { %1452 = vmatpush.bf16.msra.mxu3 %v1260_v0  ;;  %v3217_v57 = vpop.f32.mrf.mxu0 }
 0x169   :  { %2399 = vmatmul.msk.f32.gmra.mxu0 %vm84_vm0, %v71_v39  ;;  %v1185_v39 = vpack.c.bf16 %v1053_v2, %v1050_v62  ;;  %v918_v62 = vunpack.c.2.s8 %v858_v12  ;;  %v921_v2 = vunpack.c.3.s8 %v858_v12 }
 0x16a   :  { %1453 = vmatpush.bf16.msra.mxu3 %v1259_v31  ;;  %v1039_v31 = vcvt.s32.f32 %v895_v60  ;;  %v1046_v60 = vcvt.s32.f32 %v902_v52 }
 0x16b   :  { %1343 = vmatmul.bf16.gmra.mxu2 %v1185_v39  ;;  %v1062_v14 = vcvt.s32.f32 %v918_v62 }
 0x16c   :  { %v1180_v27 = vpack.c.bf16 %v1042_v6, %v1039_v31  ;;  %v1184_v39 = vpack.c.bf16 %v1049_v54, %v1046_v60  ;;  %v907_v31 = vunpack.c.2.s8 %v856_v8  ;;  %v910_v6 = vunpack.c.3.s8 %v856_v8  ;;  %v859_v8 = vld [vmem:[%s3822_s5 + $0x38] sm:$0xff] }
 0x16d   :  { %v913_v52 = vunpack.c.0.s8 %v859_v8  ;;  %v916_v53 = vunpack.c.1.s8 %v859_v8 }
 0x16e   :  { %1454 = vmatpush.bf16.msra.mxu3 %v1258_v20  ;;  %v3229_v17 = vpop.f32.mrf.mxu0  ;;  %v899_v20 = vunpack.c.3.s8 %v854_v18 }
 0x16f   :  { %v1057_v62 = vcvt.s32.f32 %v913_v52 }
 0x170   :  { %v1043_v33 = vcvt.s32.f32 %v899_v20  ;;  %v1065_v20 = vcvt.s32.f32 %v921_v2  ;;  %v1060_v2 = vcvt.s32.f32 %v916_v53 }
 0x171   :  { %2400 = vmatmul.msk.f32.gmra.mxu0 %vm84_vm0, %v72_v24  ;;  %v912_v24 = vunpack.c.0.s8 %v858_v12  ;;  %v861_v12 = vld [vmem:[%s3822_s5 + $0x48] sm:$0xff] }
 0x172   :  { %1455 = vmatpush.bf16.msra.mxu3 %v1257_v38  ;;  %v1181_v38 = vpack.c.bf16 %v1043_v33, %v1040_v32  ;;  %v1191_v32 = vpack.c.bf16 %v1065_v20, %v1062_v14  ;;  %v1051_v33 = vcvt.s32.f32 %v907_v31  ;;  %v1189_v14 = vpack.c.bf16 %v1060_v2, %v1057_v62 }
 0x173   :  { %v1056_v18 = vcvt.s32.f32 %v912_v24  ;;  %v1054_v24 = vcvt.s32.f32 %v910_v6 }
 0x176   :  { %1456 = vmatpush.bf16.msra.mxu3 %v1256_v21  ;;  %v3242_v50 = vpop.f32.mrf.mxu0  ;;  %v1059_v21 = vcvt.s32.f32 %v915_v34  ;;  %v908_v34 = vunpack.c.2.s8 %v857_v45 }
 0x178   :  { %v1188_v44 = vpack.c.bf16 %v1059_v21, %v1056_v18  ;;  %v1052_v18 = vcvt.s32.f32 %v908_v34  ;;  %v933_v34 = vunpack.c.3.s8 %v861_v12 }
 0x179   :  { %1457 = vmatmul.bf16.vlgmr.msra.gmra.mxu3 %v1177_v48  ;;  %2401 = vmatmul.msk.f32.gmra.mxu0 %vm84_vm0, %v73_v5  ;;  %v1045_v48 = vcvt.s32.f32 %v901_v40  ;;  %v1048_v5 = vcvt.s32.f32 %v904_v22  ;;  %v1186_v40 = vpack.c.bf16 %v1054_v24, %v1051_v33  ;;  %v930_v24 = vunpack.c.2.s8 %v861_v12 }
 0x17b   :  { %1348 = vmatmul.bf16.gmra.mxu2 %v1188_v44  ;;  %v1183_v56 = vpack.c.bf16 %v1048_v5, %v1045_v48  ;;  %v924_v44 = vunpack.c.0.s8 %v861_v12  ;;  %v927_v48 = vunpack.c.1.s8 %v861_v12 }
 0x17e   :  { %v3248_v0 = vpop.f32.mrf.mxu0 }
 0x181   :  { %1586 = vmatmul.bf16.vlgmr.msrb.gmra.mxu0 %v1178_v58 }
 0x186   :  { %v3250_v30 = vpop.f32.mrf.mxu0 }
 0x189   :  { %1462 = vmatmul.bf16.gmra.mxu3 %v1180_v27 }
 0x18b   :  { %1353 = vmatmul.bf16.gmra.mxu2 %v1191_v32 }
 0x18e   :  { %v3258_v42 = vpop.f32.mrf.mxu0 }
 0x191   :  { %1591 = vmatmul.bf16.gmra.mxu0 %v1181_v38  ;;  %v911_v38 = vunpack.c.3.s8 %v857_v45  ;;  %v1068_v45 = vcvt.s32.f32 %v924_v44  ;;  %v1077_v44 = vcvt.s32.f32 %v933_v34  ;;  %v864_v34 = vld [vmem:[%s3822_s5 + $0x60] sm:$0xff] }
 0x193   :  { %v1055_v21 = vcvt.s32.f32 %v911_v38 }
 0x195   :  { %v1187_v5 = vpack.c.bf16 %v1055_v21, %v1052_v18  ;;  %v922_v18 = vunpack.c.3.s8 %v859_v8  ;;  %v1074_v21 = vcvt.s32.f32 %v930_v24  ;;  %v862_v24 = vld [vmem:[%s3822_s5 + $0x50] sm:$0xff] }
 0x196   :  { %v3263_v58 = vpop.f32.mrf.mxu0  ;;  %v931_v3 = vunpack.c.2.s8 %v862_v24 }
 0x197   :  { %v1066_v53 = vcvt.s32.f32 %v922_v18  ;;  %v925_v18 = vunpack.c.0.s8 %v862_v24 }
 0x199   :  { %1467 = vmatmul.bf16.gmra.mxu3 %v1183_v56  ;;  %v1071_v56 = vcvt.s32.f32 %v927_v48 }
 0x19b   :  { %v1194_v54 = vpack.c.bf16 %v1071_v56, %v1068_v45  ;;  %v863_v45 = vld [vmem:[%s3822_s5 + $0x58] sm:$0xff] }
 0x19c   :  { %v932_v56 = vunpack.c.2.s8 %v863_v45 }
 0x19d   :  { %1358 = vmatmul.bf16.gmra.mxu2 %v1194_v54  ;;  %v935_v54 = vunpack.c.3.s8 %v863_v45 }
 0x19e   :  { %v3265_v27 = vpop.f32.mrf.mxu0 }
 0x19f   :  { %3826 = vst [vmem:[#allocation8_spill] sm:$0xff] %v3265_v27 }
 0x1a1   :  { %1596 = vmatmul.bf16.gmra.mxu0 %v1184_v39  ;;  %v860_v39 = vld [vmem:[%s3822_s5 + $0x40] sm:$0xff] }
 0x1a2   :  { %v914_v31 = vunpack.c.0.s8 %v860_v39  ;;  %v917_v6 = vunpack.c.1.s8 %v860_v39  ;;  %v920_v62 = vunpack.c.2.s8 %v860_v39  ;;  %v923_v12 = vunpack.c.3.s8 %v860_v39 }
 0x1a3   :  { %v939_v39 = vunpack.c.1.s8 %v864_v34 }
 0x1a4   :  { %v1058_v32 = vcvt.s32.f32 %v914_v31  ;;  %v1061_v33 = vcvt.s32.f32 %v917_v6  ;;  %v1076_v31 = vcvt.s32.f32 %v932_v56  ;;  %v1069_v56 = vcvt.s32.f32 %v925_v18 }
 0x1a6   :  { %v3267_v22 = vpop.f32.mrf.mxu0  ;;  %v1190_v38 = vpack.c.bf16 %v1061_v33, %v1058_v32  ;;  %v1064_v32 = vcvt.s32.f32 %v920_v62  ;;  %v1067_v33 = vcvt.s32.f32 %v923_v12  ;;  %v866_v62 = vld [vmem:[%s3822_s5 + $0x70] sm:$0xff] }
 0x1a7   :  { %3827 = vst [vmem:[#allocation9_spill] sm:$0xff] %v3267_v22  ;;  %v938_v12 = vunpack.c.0.s8 %v866_v62 }
 0x1a9   :  { %1472 = vmatmul.bf16.gmra.mxu3 %v1186_v40  ;;  %v919_v40 = vunpack.c.2.s8 %v859_v8  ;;  %v1079_v8 = vcvt.s32.f32 %v935_v54 }
 0x1ab   :  { %v1063_v52 = vcvt.s32.f32 %v919_v40  ;;  %v1193_v40 = vpack.c.bf16 %v1067_v33, %v1064_v32  ;;  %v1082_v33 = vcvt.s32.f32 %v938_v12 }
 0x1ad   :  { %v1192_v2 = vpack.c.bf16 %v1066_v53, %v1063_v52 }
 0x1ae   :  { %v3275_v60 = vpop.f32.mrf.mxu0 }
 0x1af   :  { %3828 = vst [vmem:[#allocation10_spill] sm:$0xff] %v3275_v60 }
 0x1b1   :  { %1601 = vmatmul.bf16.gmra.mxu0 %v1187_v5  ;;  %v1197_v5 = vpack.c.bf16 %v1077_v44, %v1074_v21  ;;  %v928_v21 = vunpack.c.1.s8 %v862_v24 }
 0x1b3   :  { %1363 = vmatmul.bf16.gmra.mxu2 %v1197_v5  ;;  %v1083_v5 = vcvt.s32.f32 %v939_v39  ;;  %v1072_v54 = vcvt.s32.f32 %v928_v21  ;;  %v942_v21 = vunpack.c.2.s8 %v864_v34 }
 0x1b5   :  { %v1195_v32 = vpack.c.bf16 %v1072_v54, %v1069_v56  ;;  %v1075_v54 = vcvt.s32.f32 %v931_v3  ;;  %v867_v3 = vld [vmem:[%s3822_s5 + $0x78] sm:$0xff] }
 0x1b6   :  { %v3280_v20 = vpop.f32.mrf.mxu0 }
 0x1b7   :  { %3829 = vst [vmem:[#allocation11_spill] sm:$0xff] %v3280_v20 }
 0x1b9   :  { %1477 = vmatmul.bf16.gmra.mxu3 %v1189_v14  ;;  %v1199_v14 = vpack.c.bf16 %v1079_v8, %v1076_v31  ;;  %v926_v31 = vunpack.c.0.s8 %v863_v45  ;;  %v929_v8 = vunpack.c.1.s8 %v863_v45  ;;  %v1086_v45 = vcvt.s32.f32 %v942_v21 }
 0x1bb   :  { %1621 = vmatmul.bf16.vlgmr.msrb.gmra.mxu1 %v1199_v14  ;;  %v3300_v14 = vpop.f32.mrf.mxu2  ;;  %v1073_v18 = vcvt.s32.f32 %v929_v8 }
 0x1be   :  { %v3282_v48 = vpop.f32.mrf.mxu0 }
 0x1bf   :  { %3830 = vst [vmem:[#allocation12_spill] sm:$0xff] %v3282_v48 }
 0x1c1   :  { %1606 = vmatmul.bf16.gmra.mxu0 %v1190_v38  ;;  %v936_v38 = vunpack.c.0.s8 %v864_v34 }
 0x1c3   :  { %v1080_v44 = vcvt.s32.f32 %v936_v38  ;;  %v3304_v9 = vpop.f32.mrf.mxu2 }
 0x1c5   :  { %v1200_v53 = vpack.c.bf16 %v1083_v5, %v1080_v44  ;;  %v945_v5 = vunpack.c.3.s8 %v864_v34 }
 0x1c6   :  { %v3287_v6 = vpop.f32.mrf.mxu0 }
 0x1c7   :  { %3831 = vst [vmem:[#allocation13_spill] sm:$0xff] %v3287_v6  ;;  %1368 = vmatmul.bf16.gmra.mxu2 %v1200_v53  ;;  %v1089_v6 = vcvt.s32.f32 %v945_v5 }
 0x1c9   :  { %1482 = vmatmul.bf16.gmra.mxu3 %v1192_v2  ;;  %v941_v2 = vunpack.c.1.s8 %v866_v62  ;;  %v1203_v56 = vpack.c.bf16 %v1089_v6, %v1086_v45  ;;  %v865_v6 = vld [vmem:[%s3822_s5 + $0x68] sm:$0xff] }
 0x1cb   :  { %v1085_v38 = vcvt.s32.f32 %v941_v2  ;;  %v944_v2 = vunpack.c.2.s8 %v866_v62  ;;  %v3308_v8 = vpop.f32.mrf.mxu2 }
 0x1cd   :  { %v1202_v44 = vpack.c.bf16 %v1085_v38, %v1082_v33  ;;  %v1088_v34 = vcvt.s32.f32 %v944_v2 }
 0x1ce   :  { %v3295_v52 = vpop.f32.mrf.mxu0 }
 0x1cf   :  { %3832 = vst [vmem:[#allocation14_spill] sm:$0xff] %v3295_v52  ;;  %1626 = vmatmul.bf16.gmra.mxu1 %v1202_v44  ;;  %v934_v52 = vunpack.c.3.s8 %v862_v24  ;;  %v948_v24 = vunpack.c.0.s8 %v867_v3 }
 0x1d1   :  { %1611 = vmatmul.bf16.gmra.mxu0 %v1193_v40  ;;  %v1070_v40 = vcvt.s32.f32 %v926_v31  ;;  %v1078_v12 = vcvt.s32.f32 %v934_v52  ;;  %v947_v31 = vunpack.c.3.s8 %v866_v62  ;;  %v951_v52 = vunpack.c.1.s8 %v867_v3 }
 0x1d2   :  { %v1092_v21 = vcvt.s32.f32 %v948_v24 }
 0x1d3   :  { %v1196_v53 = vpack.c.bf16 %v1073_v18, %v1070_v40  ;;  %v1091_v33 = vcvt.s32.f32 %v947_v31  ;;  %v3318_v62 = vpop.f32.mrf.mxu2  ;;  %v937_v40 = vunpack.c.0.s8 %v865_v6  ;;  %v940_v18 = vunpack.c.1.s8 %v865_v6 }
 0x1d4   :  { %v1095_v5 = vcvt.s32.f32 %v951_v52  ;;  %v954_v52 = vunpack.c.2.s8 %v867_v3 }
 0x1d5   :  { %v1205_v44 = vpack.c.bf16 %v1091_v33, %v1088_v34 }
 0x1d6   :  { %v3302_v39 = vpop.f32.mrf.mxu0  ;;  %v1206_v45 = vpack.c.bf16 %v1095_v5, %v1092_v21  ;;  %v943_v21 = vunpack.c.2.s8 %v865_v6 }
 0x1d7   :  { %3833 = vst [vmem:[#allocation15_spill] sm:$0xff] %v3302_v39  ;;  %1373 = vmatmul.bf16.gmra.mxu2 %v1203_v56  ;;  %v1081_v56 = vcvt.s32.f32 %v937_v40  ;;  %v957_v40 = vunpack.c.3.s8 %v867_v3  ;;  %v3342_v3 = vld [vmem:[%s3821_s4] ss:$0 sm:$0xff] }
 0x1d9   :  { %1487 = vmatmul.bf16.gmra.mxu3 %v1195_v32  ;;  %v1198_v32 = vpack.c.bf16 %v1078_v12, %v1075_v54  ;;  %v1084_v54 = vcvt.s32.f32 %v940_v18  ;;  %v869_v12 = vld [vmem:[%s3822_s5 + $0x88] sm:$0xff] }
 0x1da   :  { %v950_v2 = vunpack.c.0.s8 %v869_v12  ;;  %v953_v31 = vunpack.c.1.s8 %v869_v12 }
 0x1db   :  { %v1201_v34 = vpack.c.bf16 %v1084_v54, %v1081_v56  ;;  %v946_v54 = vunpack.c.3.s8 %v865_v6  ;;  %v956_v6 = vunpack.c.2.s8 %v869_v12 }
 0x1dc   :  { %v1094_v33 = vcvt.s32.f32 %v950_v2  ;;  %v1098_v2 = vcvt.s32.f32 %v954_v52 }
 0x1dd   :  { %v1100_v20 = vcvt.s32.f32 %v956_v6 }
 0x1de   :  { %v3306_v48 = vpop.f32.mrf.mxu0 }
 0x1df   :  { %3834 = vst [vmem:[#allocation16_spill] sm:$0xff] %v3306_v48  ;;  %1631 = vmatmul.bf16.gmra.mxu1 %v1205_v44  ;;  %v1097_v44 = vcvt.s32.f32 %v953_v31  ;;  %v1101_v31 = vcvt.s32.f32 %v957_v40  ;;  %v1090_v48 = vcvt.s32.f32 %v946_v54 }
 0x1e1   :  { %1616 = vmatmul.bf16.gmra.mxu0 %v1196_v53  ;;  %v1208_v24 = vpack.c.bf16 %v1097_v44, %v1094_v33  ;;  %v1209_v44 = vpack.c.bf16 %v1101_v31, %v1098_v2 }
 0x1e6   :  { %v3310_v38 = vpop.f32.mrf.mxu0 }
 0x1e7   :  { %3835 = vst [vmem:[#allocation17_spill] sm:$0xff] %v3310_v38  ;;  %1378 = vmatmul.bf16.gmra.mxu2 %v1206_v45  ;;  %v3334_v45 = vld [vmem:[%s3820_s3] ss:$0 sm:$0xff] }
 0x1e8   :  { %v395_v2 = vmul.f32 %v3334_v45, %v2959_v4 }
 0x1e9   :  { %1492 = vmatmul.bf16.gmra.mxu3 %v1198_v32  ;;  %v3325_v32 = vpop.f32.mrf.mxu2 }
 0x1ee   :  { %v3320_v53 = vpop.f32.mrf.mxu0 }
 0x1ef   :  { %3836 = vst [vmem:[#allocation18_spill] sm:$0xff] %v3320_v53  ;;  %1636 = vmatmul.bf16.gmra.mxu1 %v1208_v24  ;;  %v1087_v53 = vcvt.s32.f32 %v943_v21 }
 0x1f1   :  { %v3329_v5 = vpop.f32.mrf.mxu2 }
 0x1f6   :  { %v3327_v38 = vpop.f32.mrf.mxu0 }
 0x1f7   :  { %3837 = vst [vmem:[#allocation19_spill] sm:$0xff] %v3327_v38  ;;  %1383 = vmatmul.bf16.gmra.mxu2 %v1209_v44 }
 0x1f9   :  { %1497 = vmatmul.bf16.gmra.mxu3 %v1201_v34  ;;  %v394_v34 = vmul.f32 %v3334_v45, %v2945_v63  ;;  %v3345_v40 = vpop.f32.mrf.mxu2 }
 0x1fc   :  { %v1458_v18 = vpop.f32.mrf.mxu3 }
 0x1fd   :  { %v1459_v56 = vadd.f32 %v1458_v18, %v3300_v14  ;;  %v959_v18 = vunpack.c.3.s8 %v869_v12  ;;  %v3353_v12 = vld [vmem:[%s3822_s5 + $0x80] sm:$0xff] }
 0x1fe   :  { %v1587_v38 = vpop.f32.mrf.mxu0 }
 0x1ff   :  { %v1588_v33 = vadd.f32 %v1587_v38, %v1459_v56  ;;  %v1204_v38 = vpack.c.bf16 %v1090_v48, %v1087_v53  ;;  %v1103_v60 = vcvt.s32.f32 %v959_v18 }
 0x201   :  { %v1707_v24 = vadd.f32 %v1588_v33, %v394_v34  ;;  %v1211_v31 = vpack.c.bf16 %v1103_v60, %v1100_v20  ;;  %v3364_v53 = vpop.f32.mrf.mxu2 }
 0x203   :  { %v1858_v14 = vadd.f32 %v3342_v3, %v1707_v24  ;;  %1641 = vmatmul.bf16.gmra.mxu1 %v1211_v31  ;;  %v952_v24 = vunpack.c.1.s8 %v3353_v12 }
 0x204   :  { %v1460_v52 = vpop.f32.mrf.mxu3 }
 0x205   :  { %v1954_v39 = vmin.f32 %v1858_v14, 0.0  ;;  %v1461_v63 = vadd.f32 %v1460_v52, %v3304_v9  ;;  %v3358_v9 = vld [vmem:[%s3822_s5 + $0x90] sm:$0xff]  ;;  %v1096_v22 = vcvt.s32.f32 %v952_v24  ;;  %vm1906_vm1 = vcmp.gt.f32.partialorder %v1858_v14, 0.0 }
 0x206   :  { %v1589_v56 = vpop.f32.mrf.mxu0  ;;  %v960_v4 = vunpack.c.0.s8 %v3358_v9  ;;  %v963_v60 = vunpack.c.1.s8 %v3358_v9 }
 0x207   :  { %v2002_v21 = vmul.f32 1.442695, %v1954_v39  ;;  %v1590_v54 = vadd.f32 %v1589_v56, %v1461_v63  ;;  %v949_v39 = vunpack.c.0.s8 %v3353_v12 }
 0x208   :  { %v1104_v6 = vcvt.s32.f32 %v960_v4  ;;  %v1107_v18 = vcvt.s32.f32 %v963_v60 }
 0x209   :  { %2537 = vpow2.f32 %v2002_v21  ;;  %v1708_v34 = vadd.f32 %v1590_v54, %v395_v2  ;;  %1502 = vmatmul.bf16.gmra.mxu3 %v1204_v38  ;;  %v396_v38 = vmul.f32 %v3334_v45, %v2975_v10 }
 0x20a   :  { %v1212_v54 = vpack.c.bf16 %v1107_v18, %v1104_v6 }
 0x20b   :  { %v1859_v48 = vadd.f32 %v3342_v3, %v1708_v34  ;;  %v1093_v34 = vcvt.s32.f32 %v949_v39 }
 0x20c   :  { %v1463_v20 = vpop.f32.mrf.mxu3  ;;  %1388 = vmatmul.bf16.gmra.mxu2 %v1212_v54 }
 0x20d   :  { %v1955_v33 = vmin.f32 %v1859_v48, 0.0  ;;  %v1464_v44 = vadd.f32 %v1463_v20, %v3308_v8  ;;  %v3373_v8 = vld [vmem:[%s3822_s5 + $0xa0] sm:$0xff]  ;;  %vm1907_vm2 = vcmp.gt.f32.partialorder %v1859_v48, 0.0 }
 0x20e   :  { %v1592_v52 = vpop.f32.mrf.mxu0  ;;  %v962_v10 = vunpack.c.0.s8 %v3373_v8 }
 0x20f   :  { %v2538_v63 = vpop.eup %2537  ;;  %v2004_v56 = vmul.f32 1.442695, %v1955_v33  ;;  %v1593_v2 = vadd.f32 %v1592_v52, %v1464_v44  ;;  %v3377_v33 = vpop.f32.mrf.mxu2  ;;  %v965_v44 = vunpack.c.1.s8 %v3373_v8  ;;  %v1207_v52 = vpack.c.bf16 %v1096_v22, %v1093_v34 }
 0x210   :  { %v2452_v21 = vadd.f32 -1.0, %v2538_v63  ;;  %v1106_v63 = vcvt.s32.f32 %v962_v10  ;;  %v969_v34 = vunpack.c.3.s8 %v3358_v9 }
 0x211   :  { %2539 = vpow2.f32 %v2004_v56  ;;  %v1709_v31 = vadd.f32 %v1593_v2, %v396_v38  ;;  %v1109_v38 = vcvt.s32.f32 %v965_v44  ;;  %v397_v2 = vmul.f32 %v3334_v45, %v2989_v16 }
 0x212   :  { %v2146_v27 = vmul.f32 1.6732632, %v2452_v21  ;;  %v955_v16 = vunpack.c.2.s8 %v3353_v12 }
 0x213   :  { %v1860_v4 = vadd.f32 %v3342_v3, %v1709_v31  ;;  %v1214_v54 = vpack.c.bf16 %v1109_v38, %v1106_v63  ;;  %v1113_v38 = vcvt.s32.f32 %v969_v34 }
 0x214   :  { %v2194_v60 = vsel %vm1906_vm1, %v1858_v14, %v2146_v27  ;;  %v1465_v20 = vpop.f32.mrf.mxu3 }
 0x215   :  { %v2242_v39 = vmul.f32 1.050701, %v2194_v60  ;;  %v1956_v24 = vmin.f32 %v1860_v4, 0.0  ;;  %v1466_v6 = vadd.f32 %v1465_v20, %v3318_v62  ;;  %1646 = vmatmul.bf16.gmra.mxu1 %v1214_v54  ;;  %v966_v62 = vunpack.c.2.s8 %v3358_v9 }
 0x216   :  { %v1594_v18 = vpop.f32.mrf.mxu0  ;;  %v1099_v54 = vcvt.s32.f32 %v955_v16  ;;  %vm1908_vm3 = vcmp.gt.f32.partialorder %v1860_v4, 0.0 }
 0x217   :  { %v2540_v56 = vpop.eup %2539  ;;  %2290 = vst [vmem:[#allocation3] sm:$0xff] %v2242_v39  ;;  %v2006_v21 = vmul.f32 1.442695, %v1956_v24  ;;  %v1595_v27 = vadd.f32 %v1594_v18, %v1466_v6  ;;  %v3387_v44 = vpop.f32.mrf.mxu2  ;;  %v1110_v63 = vcvt.s32.f32 %v966_v62 }
 0x218   :  { %v2453_v14 = vadd.f32 -1.0, %v2540_v56 }
 0x219   :  { %2541 = vpow2.f32 %v2006_v21  ;;  %v1710_v31 = vadd.f32 %v1595_v27, %v397_v2  ;;  %1507 = vmatmul.bf16.gmra.mxu3 %v1207_v52  ;;  %v958_v52 = vunpack.c.3.s8 %v3353_v12  ;;  %v398_v2 = vmul.f32 %v3334_v45, %v3005_v23 }
 0x21a   :  { %v2147_v60 = vmul.f32 1.6732632, %v2453_v14  ;;  %v1215_v27 = vpack.c.bf16 %v1113_v38, %v1110_v63  ;;  %v968_v12 = vunpack.c.2.s8 %v3373_v8  ;;  %v971_v23 = vunpack.c.3.s8 %v3373_v8 }
 0x21b   :  { %v1861_v22 = vadd.f32 %v3342_v3, %v1710_v31  ;;  %v1102_v31 = vcvt.s32.f32 %v958_v52  ;;  %v399_v38 = vmul.f32 %v3334_v45, %v3019_v29 }
 0x21c   :  { %v2195_v10 = vsel %vm1907_vm2, %v1859_v48, %v2147_v60  ;;  %v1468_v20 = vpop.f32.mrf.mxu3  ;;  %1393 = vmatmul.bf16.gmra.mxu2 %v1215_v27  ;;  %v1112_v52 = vcvt.s32.f32 %v968_v12 }
 0x21d   :  { %v2243_v39 = vmul.f32 1.050701, %v2195_v10  ;;  %v1957_v24 = vmin.f32 %v1861_v22, 0.0  ;;  %v1469_v6 = vadd.f32 %v1468_v20, %v3325_v32  ;;  %vm1909_vm4 = vcmp.gt.f32.partialorder %v1861_v22, 0.0 }
 0x21e   :  { %v1597_v18 = vpop.f32.mrf.mxu0 }
 0x21f   :  { %v2542_v56 = vpop.eup %2541  ;;  %2291 = vst [vmem:[#allocation3 + $0x8] sm:$0xff] %v2243_v39  ;;  %v2008_v9 = vmul.f32 1.442695, %v1957_v24  ;;  %v1598_v48 = vadd.f32 %v1597_v18, %v1469_v6  ;;  %v3395_v10 = vpop.f32.mrf.mxu2  ;;  %v1210_v6 = vpack.c.bf16 %v1102_v31, %v1099_v54  ;;  %v1115_v18 = vcvt.s32.f32 %v971_v23 }
 0x220   :  { %v2454_v21 = vadd.f32 -1.0, %v2542_v56 }
 0x221   :  { %2543 = vpow2.f32 %v2008_v9  ;;  %v1711_v14 = vadd.f32 %v1598_v48, %v398_v2  ;;  %v1217_v9 = vpack.c.bf16 %v1115_v18, %v1112_v52  ;;  %v400_v52 = vmul.f32 %v3334_v45, %v3031_v37 }
 0x222   :  { %v2148_v60 = vmul.f32 1.6732632, %v2454_v21  ;;  %v3409_v21 = vld [vmem:[%s3822_s5 + $0xa8] sm:$0xff] }
 0x223   :  { %v1862_v32 = vadd.f32 %v3342_v3, %v1711_v14  ;;  %v972_v27 = vunpack.c.0.s8 %v3409_v21  ;;  %v975_v14 = vunpack.c.1.s8 %v3409_v21 }
 0x224   :  { %v2196_v62 = vsel %vm1908_vm3, %v1860_v4, %v2148_v60  ;;  %v1470_v34 = vpop.f32.mrf.mxu3 }
 0x225   :  { %v2244_v20 = vmul.f32 1.050701, %v2196_v62  ;;  %v1958_v39 = vmin.f32 %v1862_v32, 0.0  ;;  %v1471_v24 = vadd.f32 %v1470_v34, %v3329_v5  ;;  %v3404_v5 = vld [vmem:[%s3822_s5 + $0x98] sm:$0xff]  ;;  %1651 = vmatmul.bf16.gmra.mxu1 %v1217_v9  ;;  %vm1910_vm5 = vcmp.gt.f32.partialorder %v1862_v32, 0.0 }
 0x226   :  { %v1599_v16 = vpop.f32.mrf.mxu0  ;;  %v961_v60 = vunpack.c.0.s8 %v3404_v5 }
 0x227   :  { %v2544_v63 = vpop.eup %2543  ;;  %2292 = vst [vmem:[#allocation3 + $0x10] sm:$0xff] %v2244_v20  ;;  %v2010_v56 = vmul.f32 1.442695, %v1958_v39  ;;  %v1600_v4 = vadd.f32 %v1599_v16, %v1471_v24  ;;  %v3415_v12 = vpop.f32.mrf.mxu2  ;;  %v964_v20 = vunpack.c.1.s8 %v3404_v5  ;;  %v1116_v24 = vcvt.s32.f32 %v972_v27 }
 0x228   :  { %v2455_v2 = vadd.f32 -1.0, %v2544_v63 }
 0x229   :  { %2545 = vpow2.f32 %v2010_v56  ;;  %v1712_v48 = vadd.f32 %v1600_v4, %v399_v38  ;;  %1512 = vmatmul.bf16.gmra.mxu3 %v1210_v6  ;;  %v1119_v6 = vcvt.s32.f32 %v975_v14  ;;  %v1105_v4 = vcvt.s32.f32 %v961_v60 }
 0x22a   :  { %v2149_v8 = vmul.f32 1.6732632, %v2455_v2  ;;  %v1108_v2 = vcvt.s32.f32 %v964_v20 }
 0x22b   :  { %v1863_v29 = vadd.f32 %v3342_v3, %v1712_v48  ;;  %v1218_v38 = vpack.c.bf16 %v1119_v6, %v1116_v24  ;;  %v401_v6 = vmul.f32 %v3334_v45, %v3045_v43  ;;  %v967_v43 = vunpack.c.2.s8 %v3404_v5 }
 0x22c   :  { %v2197_v54 = vsel %vm1909_vm4, %v1861_v22, %v2149_v8  ;;  %v1473_v31 = vpop.f32.mrf.mxu3 }
 0x22d   :  { %v2245_v62 = vmul.f32 1.050701, %v2197_v54  ;;  %v1959_v34 = vmin.f32 %v1863_v29, 0.0  ;;  %v1474_v23 = vadd.f32 %v1473_v31, %v3345_v40  ;;  %1398 = vmatmul.bf16.gmra.mxu2 %v1218_v38  ;;  %v3424_v40 = vld [vmem:[%s3822_s5 + $0xb8] sm:$0xff]  ;;  %vm1911_vm6 = vcmp.gt.f32.partialorder %v1863_v29, 0.0 }
 0x22e   :  { %v1602_v39 = vpop.f32.mrf.mxu0  ;;  %v974_v37 = vunpack.c.0.s8 %v3424_v40  ;;  %v977_v54 = vunpack.c.1.s8 %v3424_v40  ;;  %v978_v38 = vunpack.c.2.s8 %v3409_v21 }
 0x22f   :  { %v2546_v16 = vpop.eup %2545  ;;  %2293 = vst [vmem:[#allocation3 + $0x18] sm:$0xff] %v2245_v62  ;;  %v2012_v22 = vmul.f32 1.442695, %v1959_v34  ;;  %v1603_v18 = vadd.f32 %v1602_v39, %v1474_v23  ;;  %v3428_v14 = vpop.f32.mrf.mxu2  ;;  %v1213_v34 = vpack.c.bf16 %v1108_v2, %v1105_v4 }
 0x230   :  { %v2456_v63 = vadd.f32 -1.0, %v2546_v16  ;;  %v1118_v20 = vcvt.s32.f32 %v974_v37  ;;  %v1121_v39 = vcvt.s32.f32 %v977_v54  ;;  %v970_v54 = vunpack.c.3.s8 %v3404_v5 }
 0x231   :  { %2547 = vpow2.f32 %v2012_v22  ;;  %v1713_v56 = vadd.f32 %v1603_v18, %v400_v52  ;;  %v980_v5 = vunpack.c.2.s8 %v3424_v40 }
 0x232   :  { %v2150_v9 = vmul.f32 1.6732632, %v2456_v63  ;;  %v1220_v22 = vpack.c.bf16 %v1121_v39, %v1118_v20 }
 0x233   :  { %v1864_v48 = vadd.f32 %v3342_v3, %v1713_v56  ;;  %v981_v56 = vunpack.c.3.s8 %v3409_v21 }
 0x234   :  { %v2198_v8 = vsel %vm1910_vm5, %v1862_v32, %v2150_v9  ;;  %v1475_v27 = vpop.f32.mrf.mxu3 }
 0x235   :  { %v2246_v31 = vmul.f32 1.050701, %v2198_v8  ;;  %v1960_v60 = vmin.f32 %v1864_v48, 0.0  ;;  %v1476_v62 = vadd.f32 %v1475_v27, %v3364_v53  ;;  %1656 = vmatmul.bf16.gmra.mxu1 %v1220_v22  ;;  %vm1912_vm7 = vcmp.gt.f32.partialorder %v1864_v48, 0.0 }
 0x236   :  { %v1604_v23 = vpop.f32.mrf.mxu0 }
 0x237   :  { %v2548_v24 = vpop.eup %2547  ;;  %2294 = vst [vmem:[#allocation3 + $0x20] sm:$0xff] %v2246_v31  ;;  %v2014_v16 = vmul.f32 1.442695, %v1960_v60  ;;  %v1605_v32 = vadd.f32 %v1604_v23, %v1476_v62  ;;  %v3438_v9 = vpop.f32.mrf.mxu2  ;;  %v1122_v60 = vcvt.s32.f32 %v978_v38  ;;  %v1125_v62 = vcvt.s32.f32 %v981_v56 }
 0x238   :  { %v2457_v52 = vadd.f32 -1.0, %v2548_v24  ;;  %v402_v23 = vmul.f32 %v3334_v45, %v3059_v49  ;;  %v983_v49 = vunpack.c.3.s8 %v3424_v40 }
 0x239   :  { %2549 = vpow2.f32 %v2014_v16  ;;  %v1714_v18 = vadd.f32 %v1605_v32, %v401_v6  ;;  %1517 = vmatmul.bf16.gmra.mxu3 %v1213_v34  ;;  %v1221_v39 = vpack.c.bf16 %v1125_v62, %v1122_v60  ;;  %v1111_v6 = vcvt.s32.f32 %v967_v43  ;;  %v3450_v43 = vpop.f32.mrf.mxu1 }
 0x23a   :  { %v2151_v63 = vmul.f32 1.6732632, %v2457_v52  ;;  %v1114_v16 = vcvt.s32.f32 %v970_v54  ;;  %v403_v54 = vmul.f32 %v3334_v45, %v3071_v55 }
 0x23b   :  { %v1865_v53 = vadd.f32 %v3342_v3, %v1714_v18 }
 0x23c   :  { %v2199_v4 = vsel %vm1911_vm6, %v1863_v29, %v2151_v63  ;;  %v1478_v2 = vpop.f32.mrf.mxu3 }
 0x23d   :  { %v2247_v37 = vmul.f32 1.050701, %v2199_v4  ;;  %v1961_v8 = vmin.f32 %v1865_v53, 0.0  ;;  %v1479_v27 = vadd.f32 %v1478_v2, %v3377_v33  ;;  %1403 = vmatmul.bf16.gmra.mxu2 %v1221_v39  ;;  %v1216_v4 = vpack.c.bf16 %v1114_v16, %v1111_v6 }
 0x23e   :  { %v1607_v31 = vpop.f32.mrf.mxu0  ;;  %vm1913_vm8 = vcmp.gt.f32.partialorder %v1865_v53, 0.0 }
 0x23f   :  { %v2550_v34 = vpop.eup %2549  ;;  %2295 = vst [vmem:[#allocation3 + $0x28] sm:$0xff] %v2247_v37  ;;  %v2016_v21 = vmul.f32 1.442695, %v1961_v8  ;;  %v1608_v29 = vadd.f32 %v1607_v31, %v1479_v27  ;;  %v3446_v18 = vpop.f32.mrf.mxu2  ;;  %v1124_v37 = vcvt.s32.f32 %v980_v5  ;;  %v1127_v8 = vcvt.s32.f32 %v983_v49 }
 0x240   :  { %v2458_v20 = vadd.f32 -1.0, %v2550_v34 }
 0x241   :  { %2551 = vpow2.f32 %v2016_v21  ;;  %v1715_v24 = vadd.f32 %v1608_v29, %v402_v23  ;;  %v1223_v62 = vpack.c.bf16 %v1127_v8, %v1124_v37  ;;  %v3462_v23 = vld [vmem:[%s3822_s5 + $0xc0] sm:$0xff]  ;;  %v3472_v49 = vpop.f32.mrf.mxu1 }
 0x242   :  { %v2152_v32 = vmul.f32 1.6732632, %v2458_v20  ;;  %v984_v21 = vunpack.c.0.s8 %v3462_v23  ;;  %v987_v29 = vunpack.c.1.s8 %v3462_v23 }
 0x243   :  { %v1866_v33 = vadd.f32 %v3342_v3, %v1715_v24 }
 0x244   :  { %v2200_v52 = vsel %vm1912_vm7, %v1864_v48, %v2152_v32  ;;  %v1480_v22 = vpop.f32.mrf.mxu3 }
 0x245   :  { %v2248_v63 = vmul.f32 1.050701, %v2200_v52  ;;  %v1962_v38 = vmin.f32 %v1866_v33, 0.0  ;;  %v1481_v56 = vadd.f32 %v1480_v22, %v3387_v44  ;;  %v3457_v44 = vld [vmem:[%s3822_s5 + $0xb0] sm:$0xff]  ;;  %1661 = vmatmul.bf16.gmra.mxu1 %v1223_v62  ;;  %vm1914_vm9 = vcmp.gt.f32.partialorder %v1866_v33, 0.0 }
 0x246   :  { %v1609_v2 = vpop.f32.mrf.mxu0  ;;  %v973_v24 = vunpack.c.0.s8 %v3457_v44  ;;  %v976_v52 = vunpack.c.1.s8 %v3457_v44 }
 0x247   :  { %v2552_v27 = vpop.eup %2551  ;;  %2296 = vst [vmem:[#allocation3 + $0x30] sm:$0xff] %v2248_v63  ;;  %v2018_v48 = vmul.f32 1.442695, %v1962_v38  ;;  %v1610_v31 = vadd.f32 %v1609_v2, %v1481_v56  ;;  %v3468_v6 = vpop.f32.mrf.mxu2  ;;  %v1128_v63 = vcvt.s32.f32 %v984_v21  ;;  %v1131_v38 = vcvt.s32.f32 %v987_v29 }
 0x248   :  { %v2459_v60 = vadd.f32 -1.0, %v2552_v27 }
 0x249   :  { %2553 = vpow2.f32 %v2018_v48  ;;  %v1716_v40 = vadd.f32 %v1610_v31, %v403_v54  ;;  %1522 = vmatmul.bf16.gmra.mxu3 %v1216_v4  ;;  %v1224_v8 = vpack.c.bf16 %v1131_v38, %v1128_v63  ;;  %v1117_v54 = vcvt.s32.f32 %v973_v24  ;;  %v3479_v31 = vld [vmem:[%s3822_s5 + $0xd0] sm:$0xff] }
 0x24a   :  { %v2153_v34 = vmul.f32 1.6732632, %v2459_v60  ;;  %v989_v21 = vunpack.c.1.s8 %v3479_v31  ;;  %v405_v63 = vmul.f32 %v3334_v45, %v3093_v11  ;;  %v979_v11 = vunpack.c.2.s8 %v3457_v44 }
 0x24b   :  { %v1867_v55 = vadd.f32 %v3342_v3, %v1716_v40 }
 0x24c   :  { %v2201_v20 = vsel %vm1913_vm8, %v1865_v53, %v2153_v34  ;;  %v1483_v39 = vpop.f32.mrf.mxu3  ;;  %v404_v53 = vmul.f32 %v3334_v45, %v3083_v61  ;;  %v986_v61 = vunpack.c.0.s8 %v3479_v31 }
 0x24d   :  { %v2249_v16 = vmul.f32 1.050701, %v2201_v20  ;;  %v1963_v32 = vmin.f32 %v1867_v55, 0.0  ;;  %v1484_v5 = vadd.f32 %v1483_v39, %v3395_v10  ;;  %v1120_v10 = vcvt.s32.f32 %v976_v52  ;;  %1408 = vmatmul.bf16.gmra.mxu2 %v1224_v8 }
 0x24e   :  { %v1612_v22 = vpop.f32.mrf.mxu0  ;;  %v1133_v52 = vcvt.s32.f32 %v989_v21  ;;  %vm1915_vm10 = vcmp.gt.f32.partialorder %v1867_v55, 0.0  ;;  %v993_v8 = vunpack.c.3.s8 %v3462_v23 }
 0x24f   :  { %v2554_v56 = vpop.eup %2553  ;;  %2297 = vst [vmem:[#allocation3 + $0x38] sm:$0xff] %v2249_v16  ;;  %v2020_v4 = vmul.f32 1.442695, %v1963_v32  ;;  %v1613_v2 = vadd.f32 %v1612_v22, %v1484_v5  ;;  %v3483_v34 = vpop.f32.mrf.mxu2  ;;  %v1219_v24 = vpack.c.bf16 %v1120_v10, %v1117_v54  ;;  %v1130_v5 = vcvt.s32.f32 %v986_v61 }
 0x250   :  { %v2460_v37 = vadd.f32 -1.0, %v2554_v56  ;;  %v3487_v32 = vpop.f32.mrf.mxu1 }
 0x251   :  { %2555 = vpow2.f32 %v2020_v4  ;;  %v1717_v27 = vadd.f32 %v1613_v2, %v404_v53  ;;  %v1226_v53 = vpack.c.bf16 %v1133_v52, %v1130_v5 }
 0x252   :  { %v2154_v48 = vmul.f32 1.6732632, %v2460_v37  ;;  %v990_v37 = vunpack.c.2.s8 %v3462_v23  ;;  %v406_v23 = vmul.f32 %v3334_v45, %v3099_v26  ;;  %v995_v26 = vunpack.c.3.s8 %v3479_v31 }
 0x253   :  { %v1868_v60 = vadd.f32 %v3342_v3, %v1717_v27 }
 0x254   :  { %v2202_v62 = vsel %vm1914_vm9, %v1866_v33, %v2154_v48  ;;  %v1485_v40 = vpop.f32.mrf.mxu3 }
 0x255   :  { %v2250_v29 = vmul.f32 1.050701, %v2202_v62  ;;  %v1964_v20 = vmin.f32 %v1868_v60, 0.0  ;;  %v1486_v39 = vadd.f32 %v1485_v40, %v3415_v12  ;;  %1666 = vmatmul.bf16.gmra.mxu1 %v1226_v53  ;;  %v982_v40 = vunpack.c.3.s8 %v3457_v44 }
 0x256   :  { %v1614_v16 = vpop.f32.mrf.mxu0  ;;  %vm1916_vm11 = vcmp.gt.f32.partialorder %v1868_v60, 0.0 }
 0x257   :  { %v2556_v22 = vpop.eup %2555  ;;  %2298 = vst [vmem:[#allocation3 + $0x40] sm:$0xff] %v2250_v29  ;;  %v2022_v33 = vmul.f32 1.442695, %v1964_v20  ;;  %v1615_v38 = vadd.f32 %v1614_v16, %v1486_v39  ;;  %v3495_v10 = vpop.f32.mrf.mxu2  ;;  %v1134_v20 = vcvt.s32.f32 %v990_v37  ;;  %v1137_v39 = vcvt.s32.f32 %v993_v8 }
 0x258   :  { %v2461_v56 = vadd.f32 -1.0, %v2556_v22  ;;  %v3499_v29 = vpop.f32.mrf.mxu1 }
 0x259   :  { %2557 = vpow2.f32 %v2022_v33  ;;  %v1718_v4 = vadd.f32 %v1615_v38, %v405_v63  ;;  %1527 = vmatmul.bf16.gmra.mxu3 %v1219_v24  ;;  %v1227_v52 = vpack.c.bf16 %v1137_v39, %v1134_v20  ;;  %v1123_v63 = vcvt.s32.f32 %v979_v11 }
 0x25a   :  { %v2155_v2 = vmul.f32 1.6732632, %v2461_v56  ;;  %v992_v38 = vunpack.c.2.s8 %v3479_v31 }
 0x25b   :  { %v1869_v12 = vadd.f32 %v3342_v3, %v1718_v4 }
 0x25c   :  { %v2203_v27 = vsel %vm1915_vm10, %v1867_v55, %v2155_v2  ;;  %v1488_v54 = vpop.f32.mrf.mxu3 }
 0x25d   :  { %v2251_v48 = vmul.f32 1.050701, %v2203_v27  ;;  %v1965_v61 = vmin.f32 %v1869_v12, 0.0  ;;  %v1489_v62 = vadd.f32 %v1488_v54, %v3428_v14  ;;  %v1126_v14 = vcvt.s32.f32 %v982_v40  ;;  %1413 = vmatmul.bf16.gmra.mxu2 %v1227_v52 }
 0x25e   :  { %v1617_v21 = vpop.f32.mrf.mxu0  ;;  %v407_v40 = vmul.f32 %v3334_v45, %v3108_v35  ;;  %vm1917_vm12 = vcmp.gt.f32.partialorder %v1869_v12, 0.0 }
 0x25f   :  { %v2558_v24 = vpop.eup %2557  ;;  %2299 = vst [vmem:[#allocation3 + $0x48] sm:$0xff] %v2251_v48  ;;  %v2024_v55 = vmul.f32 1.442695, %v1965_v61  ;;  %v1618_v16 = vadd.f32 %v1617_v21, %v1489_v62  ;;  %v3505_v4 = vpop.f32.mrf.mxu2  ;;  %v1222_v27 = vpack.c.bf16 %v1126_v14, %v1123_v63  ;;  %v1136_v48 = vcvt.s32.f32 %v992_v38 }
 0x260   :  { %v2462_v5 = vadd.f32 -1.0, %v2558_v24  ;;  %v3509_v11 = vpop.f32.mrf.mxu1  ;;  %v1139_v61 = vcvt.s32.f32 %v995_v26 }
 0x261   :  { %2559 = vpow2.f32 %v2024_v55  ;;  %v1719_v22 = vadd.f32 %v1618_v16, %v406_v23  ;;  %v3521_v23 = vld [vmem:[%s3822_s5 + $0xd8] sm:$0xff] }
 0x262   :  { %v2156_v33 = vmul.f32 1.6732632, %v2462_v5  ;;  %v1229_v39 = vpack.c.bf16 %v1139_v61, %v1136_v48  ;;  %v996_v55 = vunpack.c.0.s8 %v3521_v23  ;;  %v999_v16 = vunpack.c.1.s8 %v3521_v23 }
 0x263   :  { %v1870_v44 = vadd.f32 %v3342_v3, %v1719_v22 }
 0x264   :  { %v2204_v56 = vsel %vm1916_vm11, %v1868_v60, %v2156_v33  ;;  %v1490_v53 = vpop.f32.mrf.mxu3  ;;  %v1140_v26 = vcvt.s32.f32 %v996_v55 }
 0x265   :  { %v2252_v2 = vmul.f32 1.050701, %v2204_v56  ;;  %v1966_v37 = vmin.f32 %v1870_v44, 0.0  ;;  %v1491_v8 = vadd.f32 %v1490_v53, %v3438_v9  ;;  %v3516_v9 = vld [vmem:[%s3822_s5 + $0xc8] sm:$0xff]  ;;  %1671 = vmatmul.bf16.gmra.mxu1 %v1229_v39  ;;  %vm1918_vm13 = vcmp.gt.f32.partialorder %v1870_v44, 0.0 }
 0x266   :  { %v1619_v54 = vpop.f32.mrf.mxu0  ;;  %v985_v22 = vunpack.c.0.s8 %v3516_v9  ;;  %v988_v56 = vunpack.c.1.s8 %v3516_v9 }
 0x267   :  { %v2560_v62 = vpop.eup %2559  ;;  %2300 = vst [vmem:[#allocation3 + $0x50] sm:$0xff] %v2252_v2  ;;  %v2026_v60 = vmul.f32 1.442695, %v1966_v37  ;;  %v1620_v21 = vadd.f32 %v1619_v54, %v1491_v8  ;;  %v3527_v63 = vpop.f32.mrf.mxu2  ;;  %v1143_v2 = vcvt.s32.f32 %v999_v16  ;;  %v408_v8 = vmul.f32 %v3334_v45, %v3114_v28 }
 0x268   :  { %v2463_v20 = vadd.f32 -1.0, %v2560_v62  ;;  %v3531_v53 = vpop.f32.mrf.mxu1  ;;  %v1129_v62 = vcvt.s32.f32 %v985_v22 }
 0x269   :  { %2561 = vpow2.f32 %v2026_v60  ;;  %v1720_v31 = vadd.f32 %v1620_v21, %v407_v40  ;;  %1532 = vmatmul.bf16.gmra.mxu3 %v1222_v27  ;;  %v1230_v48 = vpack.c.bf16 %v1143_v2, %v1140_v26  ;;  %v3539_v60 = vld [vmem:[%s3822_s5 + $0xe8] sm:$0xff] }
 0x26a   :  { %v2157_v24 = vmul.f32 1.6732632, %v2463_v20  ;;  %v998_v21 = vunpack.c.0.s8 %v3539_v60 }
 0x26b   :  { %v1871_v35 = vadd.f32 %v3342_v3, %v1720_v31  ;;  %v1001_v31 = vunpack.c.1.s8 %v3539_v60 }
 0x26c   :  { %v2205_v5 = vsel %vm1917_vm12, %v1869_v12, %v2157_v24  ;;  %v1493_v52 = vpop.f32.mrf.mxu3  ;;  %v1142_v22 = vcvt.s32.f32 %v998_v21 }
 0x26d   :  { %v2253_v14 = vmul.f32 1.050701, %v2205_v5  ;;  %v1967_v33 = vmin.f32 %v1871_v35, 0.0  ;;  %v1494_v38 = vadd.f32 %v1493_v52, %v3446_v18  ;;  %v1132_v18 = vcvt.s32.f32 %v988_v56  ;;  %1418 = vmatmul.bf16.gmra.mxu2 %v1230_v48 }
 0x26e   :  { %vm1919_vm14 = vcmp.gt.f32.partialorder %v1871_v35, 0.0  ;;  %v991_v48 = vunpack.c.2.s8 %v3516_v9 }
 0x26f   :  { %v2562_v37 = vpop.eup %2561  ;;  %2301 = vst [vmem:[#allocation3 + $0x58] sm:$0xff] %v2253_v14  ;;  %v2028_v12 = vmul.f32 1.442695, %v1967_v33  ;;  %v1623_v27 = vadd.f32 %v3450_v43, %v1494_v38  ;;  %v3543_v39 = vpop.f32.mrf.mxu2  ;;  %v1225_v5 = vpack.c.bf16 %v1132_v18, %v1129_v62  ;;  %v1145_v14 = vcvt.s32.f32 %v1001_v31 }
 0x270   :  { %v2464_v54 = vadd.f32 -1.0, %v2562_v37  ;;  %v3547_v52 = vpop.f32.mrf.mxu1  ;;  %v409_v38 = vmul.f32 %v3334_v45, %v3122_v46 }
 0x271   :  { %2563 = vpow2.f32 %v2028_v12  ;;  %v1721_v61 = vadd.f32 %v1623_v27, %v408_v8  ;;  %v1232_v2 = vpack.c.bf16 %v1145_v14, %v1142_v22  ;;  %v1002_v12 = vunpack.c.2.s8 %v3521_v23 }
 0x272   :  { %v2158_v40 = vmul.f32 1.6732632, %v2464_v54  ;;  %v1005_v27 = vunpack.c.3.s8 %v3521_v23  ;;  %v410_v23 = vmul.f32 %v3334_v45, %v3128_v41  ;;  %v1135_v22 = vcvt.s32.f32 %v991_v48 }
 0x273   :  { %v1872_v28 = vadd.f32 %v3342_v3, %v1721_v61 }
 0x274   :  { %v2206_v20 = vsel %vm1918_vm13, %v1870_v44, %v2158_v40  ;;  %v1495_v43 = vpop.f32.mrf.mxu3  ;;  %v994_v40 = vunpack.c.3.s8 %v3516_v9 }
 0x275   :  { %v2254_v24 = vmul.f32 1.050701, %v2206_v20  ;;  %v1968_v55 = vmin.f32 %v1872_v28, 0.0  ;;  %v1496_v16 = vadd.f32 %v1495_v43, %v3468_v6  ;;  %1676 = vmatmul.bf16.gmra.mxu1 %v1232_v2  ;;  %v1146_v20 = vcvt.s32.f32 %v1002_v12 }
 0x276   :  { %v1149_v43 = vcvt.s32.f32 %v1005_v27  ;;  %vm1920_vm15 = vcmp.gt.f32.partialorder %v1872_v28, 0.0 }
 0x277   :  { %v2564_v33 = vpop.eup %2563  ;;  %2302 = vst [vmem:[#allocation3 + $0x60] sm:$0xff] %v2254_v24  ;;  %v2030_v44 = vmul.f32 1.442695, %v1968_v55  ;;  %v1625_v56 = vadd.f32 %v3472_v49, %v1496_v16  ;;  %v3556_v61 = vpop.f32.mrf.mxu2 }
 0x278   :  { %v2465_v26 = vadd.f32 -1.0, %v2564_v33  ;;  %v3560_v21 = vpop.f32.mrf.mxu1  ;;  %v1233_v16 = vpack.c.bf16 %v1149_v43, %v1146_v20  ;;  %v1004_v33 = vunpack.c.2.s8 %v3539_v60 }
 0x279   :  { %2565 = vpow2.f32 %v2030_v44  ;;  %v1722_v37 = vadd.f32 %v1625_v56, %v409_v38  ;;  %1537 = vmatmul.bf16.gmra.mxu3 %v1225_v5  ;;  %v1007_v56 = vunpack.c.3.s8 %v3539_v60 }
 0x27a   :  { %v2159_v8 = vmul.f32 1.6732632, %v2465_v26 }
 0x27b   :  { %v1873_v6 = vadd.f32 %v3342_v3, %v1722_v37  ;;  %v1151_v12 = vcvt.s32.f32 %v1007_v56 }
 0x27c   :  { %v2207_v54 = vsel %vm1919_vm14, %v1871_v35, %v2159_v8  ;;  %v1498_v46 = vpop.f32.mrf.mxu3  ;;  %v1148_v8 = vcvt.s32.f32 %v1004_v33  ;;  %v412_v33 = vmul.f32 %v3334_v45, %v3150_v51 }
 0x27d   :  { %v2255_v49 = vmul.f32 1.050701, %v2207_v54  ;;  %v1969_v62 = vmin.f32 %v1873_v6, 0.0  ;;  %v1499_v18 = vadd.f32 %v1498_v46, %v3483_v34  ;;  %v1138_v34 = vcvt.s32.f32 %v994_v40  ;;  %1423 = vmatmul.bf16.gmra.mxu2 %v1233_v16 }
 0x27e   :  { %v411_v54 = vmul.f32 %v3334_v45, %v3138_v59  ;;  %v3584_v59 = vld [vmem:[%s3822_s5 + $0xf0] sm:$0xff]  ;;  %vm1921_vm0 = vcmp.gt.f32.partialorder %v1873_v6, 0.0 }
 0x27f   :  { %v2566_v31 = vpop.eup %2565  ;;  %2303 = vst [vmem:[#allocation3 + $0x68] sm:$0xff] %v2255_v49  ;;  %v2032_v35 = vmul.f32 1.442695, %v1969_v62  ;;  %v1628_v24 = vadd.f32 %v3487_v32, %v1499_v18  ;;  %v3567_v41 = vpop.f32.mrf.mxu2  ;;  %v1228_v37 = vpack.c.bf16 %v1138_v34, %v1135_v22  ;;  %v1235_v62 = vpack.c.bf16 %v1151_v12, %v1148_v8  ;;  %v3602_v8 = vld [vmem:[%s3822_s5 + $0x100] sm:$0xff] }
 0x280   :  { %v2466_v55 = vadd.f32 -1.0, %v2566_v31  ;;  %v3574_v48 = vpop.f32.mrf.mxu1  ;;  %v1008_v40 = vunpack.c.0.s8 %v3584_v59  ;;  %v1011_v20 = vunpack.c.1.s8 %v3584_v59  ;;  %v1010_v45 = vunpack.c.0.s8 %v3602_v8 }
 0x281   :  { %2567 = vpow2.f32 %v2032_v35  ;;  %v1723_v5 = vadd.f32 %v1628_v24, %v410_v23 }
 0x282   :  { %v2160_v14 = vmul.f32 1.6732632, %v2466_v55  ;;  %v1152_v22 = vcvt.s32.f32 %v1008_v40  ;;  %v1155_v34 = vcvt.s32.f32 %v1011_v20 }
 0x283   :  { %v1874_v9 = vadd.f32 %v3342_v3, %v1723_v5 }
 0x284   :  { %v2208_v38 = vsel %vm1920_vm15, %v1872_v28, %v2160_v14  ;;  %v1500_v44 = vpop.f32.mrf.mxu3 }
 0x285   :  { %v2256_v32 = vmul.f32 1.050701, %v2208_v38  ;;  %v1970_v26 = vmin.f32 %v1874_v9, 0.0  ;;  %v1501_v2 = vadd.f32 %v1500_v44, %v3495_v10  ;;  %v3579_v10 = vld [vmem:[%s3822_s5 + $0xe0] sm:$0xff]  ;;  %1681 = vmatmul.bf16.gmra.mxu1 %v1235_v62  ;;  %vm1922_vm1 = vcmp.gt.f32.partialorder %v1874_v9, 0.0 }
 0x286   :  { %v997_v23 = vunpack.c.0.s8 %v3579_v10  ;;  %v1000_v5 = vunpack.c.1.s8 %v3579_v10 }
 0x287   :  { %v2568_v27 = vpop.eup %2567  ;;  %2304 = vst [vmem:[#allocation3 + $0x70] sm:$0xff] %v2256_v32  ;;  %v2034_v46 = vmul.f32 1.442695, %v1970_v26  ;;  %v1630_v28 = vadd.f32 %v3499_v29, %v1501_v2  ;;  %v3590_v35 = vpop.f32.mrf.mxu2  ;;  %v1236_v32 = vpack.c.bf16 %v1155_v34, %v1152_v22 }
 0x288   :  { %v2467_v49 = vadd.f32 -1.0, %v2568_v27  ;;  %v3597_v44 = vpop.f32.mrf.mxu1  ;;  %v1141_v2 = vcvt.s32.f32 %v997_v23  ;;  %v1013_v27 = vunpack.c.1.s8 %v3602_v8 }
 0x289   :  { %2569 = vpow2.f32 %v2034_v46  ;;  %v1724_v60 = vadd.f32 %v1630_v28, %v411_v54  ;;  %1542 = vmatmul.bf16.gmra.mxu3 %v1228_v37 }
 0x28a   :  { %v2161_v18 = vmul.f32 1.6732632, %v2467_v49 }
 0x28b   :  { %v1875_v29 = vadd.f32 %v3342_v3, %v1724_v60  ;;  %v1154_v60 = vcvt.s32.f32 %v1010_v45 }
 0x28c   :  { %v2209_v43 = vsel %vm1921_vm0, %v1873_v6, %v2161_v18  ;;  %v1503_v31 = vpop.f32.mrf.mxu3  ;;  %v1157_v18 = vcvt.s32.f32 %v1013_v27 }
 0x28d   :  { %v2257_v24 = vmul.f32 1.050701, %v2209_v43  ;;  %v1971_v55 = vmin.f32 %v1875_v29, 0.0  ;;  %v1504_v16 = vadd.f32 %v1503_v31, %v3505_v4  ;;  %v1144_v4 = vcvt.s32.f32 %v1000_v5  ;;  %1428 = vmatmul.bf16.gmra.mxu2 %v1236_v32 }
 0x28e   :  { %v1238_v23 = vpack.c.bf16 %v1157_v18, %v1154_v60  ;;  %vm1923_vm2 = vcmp.gt.f32.partialorder %v1875_v29, 0.0  ;;  %v1014_v5 = vunpack.c.2.s8 %v3584_v59  ;;  %v1019_v60 = vunpack.c.3.s8 %v3602_v8 }
 0x28f   :  { %v2570_v14 = vpop.eup %2569  ;;  %2305 = vst [vmem:[#allocation3 + $0x78] sm:$0xff] %v2257_v24  ;;  %v2036_v38 = vmul.f32 1.442695, %v1971_v55  ;;  %v1633_v6 = vadd.f32 %v3509_v11, %v1504_v16  ;;  %v1231_v49 = vpack.c.bf16 %v1144_v4, %v1141_v2  ;;  %v3608_v62 = vpop.f32.mrf.mxu2  ;;  %v3623_v16 = vld [vmem:[%s3821_s4] ss:$0 sm:$0xff] }
 0x290   :  { %v2468_v56 = vadd.f32 -1.0, %v2570_v14  ;;  %v1003_v14 = vunpack.c.2.s8 %v3579_v10 }
 0x291   :  { %2571 = vpow2.f32 %v2036_v38  ;;  %v1725_v26 = vadd.f32 %v1633_v6, %v412_v33 }
 0x292   :  { %v2162_v37 = vmul.f32 1.6732632, %v2468_v56  ;;  %v3618_v31 = vpop.f32.mrf.mxu1  ;;  %v1006_v56 = vunpack.c.3.s8 %v3579_v10  ;;  %v1147_v27 = vcvt.s32.f32 %v1003_v14 }
 0x293   :  { %v1876_v51 = vadd.f32 %v3342_v3, %v1725_v26  ;;  %v3613_v3 = vld [vmem:[%s3820_s3] ss:$0 sm:$0xff]  ;;  %v1158_v26 = vcvt.s32.f32 %v1014_v5 }
 0x294   :  { %v2210_v11 = vsel %vm1922_vm1, %v1874_v9, %v2162_v37  ;;  %v1505_v12 = vpop.f32.mrf.mxu3  ;;  %v413_v9 = vmul.f32 %v3613_v3, %v3163_v25  ;;  %v414_v37 = vmul.f32 %v3613_v3, %v3171_v7  ;;  %v1150_v10 = vcvt.s32.f32 %v1006_v56 }
 0x295   :  { %v2258_v54 = vmul.f32 1.050701, %v2210_v11  ;;  %v1972_v46 = vmin.f32 %v1876_v51, 0.0  ;;  %v1506_v28 = vadd.f32 %v1505_v12, %v3527_v63  ;;  %1686 = vmatmul.bf16.gmra.mxu1 %v1238_v23  ;;  %vm1924_vm3 = vcmp.gt.f32.partialorder %v1876_v51, 0.0 }
 0x297   :  { %v2572_v40 = vpop.eup %2571  ;;  %2306 = vst [vmem:[#allocation3 + $0x80] sm:$0xff] %v2258_v54  ;;  %v2038_v20 = vmul.f32 1.442695, %v1972_v46  ;;  %v1635_v43 = vadd.f32 %v3531_v53, %v1506_v28  ;;  %v1017_v53 = vunpack.c.3.s8 %v3584_v59  ;;  %v3631_v32 = vpop.f32.mrf.mxu2  ;;  %v1016_v28 = vunpack.c.2.s8 %v3602_v8 }
 0x298   :  { %v2469_v63 = vadd.f32 -1.0, %v2572_v40 }
 0x299   :  { %2573 = vpow2.f32 %v2038_v20  ;;  %v1726_v24 = vadd.f32 %v1635_v43, %v413_v9  ;;  %1547 = vmatmul.bf16.gmra.mxu3 %v1231_v49  ;;  %v1161_v2 = vcvt.s32.f32 %v1017_v53  ;;  %v1234_v9 = vpack.c.bf16 %v1150_v10, %v1147_v27 }
 0x29a   :  { %v2163_v55 = vmul.f32 1.6732632, %v2469_v63  ;;  %v3636_v45 = vpop.f32.mrf.mxu1  ;;  %v1160_v43 = vcvt.s32.f32 %v1016_v28  ;;  %v1163_v63 = vcvt.s32.f32 %v1019_v60 }
 0x29b   :  { %v1877_v25 = vadd.f32 %v3623_v16, %v1726_v24  ;;  %v1239_v12 = vpack.c.bf16 %v1161_v2, %v1158_v26  ;;  %v415_v24 = vmul.f32 %v3613_v3, %v3177_v1  ;;  %v3657_v1 = vld [vmem:[%s3822_s5 + $0x108] sm:$0xff] }
 0x29c   :  { %v2211_v22 = vsel %vm1923_vm2, %v1875_v29, %v2163_v55  ;;  %v1508_v34 = vpop.f32.mrf.mxu3  ;;  %v1241_v53 = vpack.c.bf16 %v1163_v63, %v1160_v43  ;;  %v1020_v14 = vunpack.c.0.s8 %v3657_v1 }
 0x29d   :  { %v2259_v33 = vmul.f32 1.050701, %v2211_v22  ;;  %v1973_v38 = vmin.f32 %v1877_v25, 0.0  ;;  %v1509_v6 = vadd.f32 %v1508_v34, %v3543_v39  ;;  %1433 = vmatmul.bf16.gmra.mxu2 %v1239_v12  ;;  %vm1925_vm4 = vcmp.gt.f32.partialorder %v1877_v25, 0.0 }
 0x29f   :  { %v2574_v4 = vpop.eup %2573  ;;  %2307 = vst [vmem:[#allocation3 + $0x88] sm:$0xff] %v2259_v33  ;;  %v2040_v59 = vmul.f32 1.442695, %v1973_v38  ;;  %v1638_v29 = vadd.f32 %v3547_v52, %v1509_v6  ;;  %v3642_v20 = vpop.f32.mrf.mxu2  ;;  %v1023_v33 = vunpack.c.1.s8 %v3657_v1 }
 0x2a0   :  { %v2470_v11 = vadd.f32 -1.0, %v2574_v4 }
 0x2a1   :  { %2575 = vpow2.f32 %v2040_v59  ;;  %v1727_v39 = vadd.f32 %v1638_v29, %v414_v37  ;;  %v1164_v29 = vcvt.s32.f32 %v1020_v14 }
 0x2a2   :  { %v2164_v54 = vmul.f32 1.6732632, %v2470_v11  ;;  %v3647_v5 = vpop.f32.mrf.mxu1  ;;  %v1167_v11 = vcvt.s32.f32 %v1023_v33 }
 0x2a3   :  { %v1878_v46 = vadd.f32 %v3623_v16, %v1727_v39  ;;  %v416_v39 = vmul.f32 %v3613_v3, %v3183_v13 }
 0x2a4   :  { %v2212_v7 = vsel %vm1924_vm3, %v1876_v51, %v2164_v54  ;;  %v1510_v49 = vpop.f32.mrf.mxu3  ;;  %v1242_v28 = vpack.c.bf16 %v1167_v11, %v1164_v29 }
 0x2a5   :  { %v2260_v52 = vmul.f32 1.050701, %v2212_v7  ;;  %v1974_v18 = vmin.f32 %v1878_v46, 0.0  ;;  %v1511_v40 = vadd.f32 %v1510_v49, %v3556_v61  ;;  %v3652_v61 = vld [vmem:[%s3822_s5 + $0xf8] sm:$0xff]  ;;  %1691 = vmatmul.bf16.gmra.mxu1 %v1241_v53  ;;  %vm1926_vm5 = vcmp.gt.f32.partialorder %v1878_v46, 0.0 }
 0x2a6   :  { %v1009_v56 = vunpack.c.0.s8 %v3652_v61  ;;  %v1012_v37 = vunpack.c.1.s8 %v3652_v61 }
 0x2a7   :  { %v2576_v23 = vpop.eup %2575  ;;  %2308 = vst [vmem:[#allocation3 + $0x90] sm:$0xff] %v2260_v52  ;;  %v2042_v55 = vmul.f32 1.442695, %v1974_v18  ;;  %v1640_v51 = vadd.f32 %v3560_v21, %v1511_v40  ;;  %v3665_v59 = vpop.f32.mrf.mxu2  ;;  %v3675_v52 = vld [vmem:[%s3822_s5 + $0x118] sm:$0xff] }
 0x2a8   :  { %v2471_v8 = vadd.f32 -1.0, %v2576_v23  ;;  %v1153_v7 = vcvt.s32.f32 %v1009_v56  ;;  %v1156_v49 = vcvt.s32.f32 %v1012_v37 }
 0x2a9   :  { %2577 = vpow2.f32 %v2042_v55  ;;  %v1728_v22 = vadd.f32 %v1640_v51, %v415_v24  ;;  %1552 = vmatmul.bf16.gmra.mxu3 %v1234_v9  ;;  %v1025_v9 = vunpack.c.1.s8 %v3675_v52 }
 0x2aa   :  { %v2165_v34 = vmul.f32 1.6732632, %v2471_v8  ;;  %v3670_v10 = vpop.f32.mrf.mxu1  ;;  %v1237_v24 = vpack.c.bf16 %v1156_v49, %v1153_v7 }
 0x2ab   :  { %v1879_v21 = vadd.f32 %v3623_v16, %v1728_v22  ;;  %v1169_v8 = vcvt.s32.f32 %v1025_v9  ;;  %v417_v22 = vmul.f32 %v3613_v3, %v3189_v19  ;;  %v1029_v19 = vunpack.c.3.s8 %v3657_v1 }
 0x2ac   :  { %v2213_v38 = vsel %vm1925_vm4, %v1877_v25, %v2165_v34  ;;  %v1513_v6 = vpop.f32.mrf.mxu3 }
 0x2ad   :  { %v2261_v26 = vmul.f32 1.050701, %v2213_v38  ;;  %v1975_v2 = vmin.f32 %v1879_v21, 0.0  ;;  %v1514_v4 = vadd.f32 %v1513_v6, %v3567_v41  ;;  %1438 = vmatmul.bf16.gmra.mxu2 %v1242_v28  ;;  %vm1927_vm6 = vcmp.gt.f32.partialorder %v1879_v21, 0.0 }
 0x2af   :  { %v2578_v12 = vpop.eup %2577  ;;  %2309 = vst [vmem:[#allocation3 + $0x98] sm:$0xff] %v2261_v26  ;;  %v2044_v27 = vmul.f32 1.442695, %v1975_v2  ;;  %v1643_v25 = vadd.f32 %v3574_v48, %v1514_v4  ;;  %v1022_v48 = vunpack.c.0.s8 %v3675_v52  ;;  %v1026_v26 = vunpack.c.2.s8 %v3657_v1 }
 0x2b0   :  { %v2472_v54 = vadd.f32 -1.0, %v2578_v12  ;;  %v3681_v55 = vpop.f32.mrf.mxu2  ;;  %v1018_v12 = vunpack.c.3.s8 %v3652_v61 }
 0x2b1   :  { %2579 = vpow2.f32 %v2044_v27  ;;  %v1729_v41 = vadd.f32 %v1643_v25, %v416_v39  ;;  %v1166_v51 = vcvt.s32.f32 %v1022_v48  ;;  %v1170_v39 = vcvt.s32.f32 %v1026_v26 }
 0x2b2   :  { %v2166_v60 = vmul.f32 1.6732632, %v2472_v54  ;;  %v3686_v33 = vpop.f32.mrf.mxu1  ;;  %v1173_v27 = vcvt.s32.f32 %v1029_v19  ;;  %v418_v54 = vmul.f32 %v3613_v3, %v3198_v36  ;;  %v1028_v36 = vunpack.c.2.s8 %v3675_v52 }
 0x2b3   :  { %v1880_v13 = vadd.f32 %v3623_v16, %v1729_v41  ;;  %v1244_v38 = vpack.c.bf16 %v1169_v8, %v1166_v51 }
 0x2b4   :  { %v2214_v18 = vsel %vm1926_vm5, %v1878_v46, %v2166_v60  ;;  %v1515_v40 = vpop.f32.mrf.mxu3  ;;  %v1245_v7 = vpack.c.bf16 %v1173_v27, %v1170_v39  ;;  %v1172_v51 = vcvt.s32.f32 %v1028_v36  ;;  %v421_v36 = vmul.f32 %v3613_v3, %v3217_v57 }
 0x2b5   :  { %v2262_v43 = vmul.f32 1.050701, %v2214_v18  ;;  %v1976_v63 = vmin.f32 %v1880_v13, 0.0  ;;  %v1516_v23 = vadd.f32 %v1515_v40, %v3590_v35  ;;  %1696 = vmatmul.bf16.gmra.mxu1 %v1244_v38  ;;  %vm1928_vm7 = vcmp.gt.f32.partialorder %v1880_v13, 0.0 }
 0x2b7   :  { %v2580_v53 = vpop.eup %2579  ;;  %2310 = vst [vmem:[#allocation3 + $0xa0] sm:$0xff] %v2262_v43  ;;  %v2046_v34 = vmul.f32 1.442695, %v1976_v63  ;;  %v1645_v46 = vadd.f32 %v3597_v44, %v1516_v23  ;;  %v1015_v44 = vunpack.c.2.s8 %v3652_v61 }
 0x2b8   :  { %v2473_v14 = vadd.f32 -1.0, %v2580_v53  ;;  %v3697_v41 = vpop.f32.mrf.mxu2 }
 0x2b9   :  { %2581 = vpow2.f32 %v2046_v34  ;;  %v1730_v6 = vadd.f32 %v1645_v46, %v417_v22  ;;  %1557 = vmatmul.bf16.gmra.mxu3 %v1237_v24  ;;  %v1159_v60 = vcvt.s32.f32 %v1015_v44  ;;  %v419_v22 = vmul.f32 %v3613_v3, %v3204_v15 }
 0x2ba   :  { %v2167_v35 = vmul.f32 1.6732632, %v2473_v14  ;;  %v3699_v61 = vpop.f32.mrf.mxu1 }
 0x2bb   :  { %v1881_v56 = vadd.f32 %v3623_v16, %v1730_v6 }
 0x2bc   :  { %v2215_v2 = vsel %vm1927_vm6, %v1879_v21, %v2167_v35  ;;  %v1518_v4 = vpop.f32.mrf.mxu3 }
 0x2bd   :  { %v2263_v37 = vmul.f32 1.050701, %v2215_v2  ;;  %v1977_v29 = vmin.f32 %v1881_v56, 0.0  ;;  %v1519_v11 = vadd.f32 %v1518_v4, %v3608_v62  ;;  %v1162_v62 = vcvt.s32.f32 %v1018_v12  ;;  %1443 = vmatmul.bf16.gmra.mxu2 %v1245_v7 }
 0x2be   :  { %vm1929_vm8 = vcmp.gt.f32.partialorder %v1881_v56, 0.0 }
 0x2bf   :  { %v2582_v25 = vpop.eup %2581  ;;  %2311 = vst [vmem:[#allocation3 + $0xa8] sm:$0xff] %v2263_v37  ;;  %v2048_v28 = vmul.f32 1.442695, %v1977_v29  ;;  %v1648_v1 = vadd.f32 %v3618_v31, %v1519_v11  ;;  %v1031_v31 = vunpack.c.3.s8 %v3675_v52  ;;  %v1240_v24 = vpack.c.bf16 %v1162_v62, %v1159_v60 }
 0x2c0   :  { %v2474_v21 = vadd.f32 -1.0, %v2582_v25  ;;  %v3713_v6 = vpop.f32.mrf.mxu2  ;;  %v420_v11 = vmul.f32 %v3613_v3, %v3210_v47 }
 0x2c1   :  { %2583 = vpow2.f32 %v2048_v28  ;;  %v1731_v49 = vadd.f32 %v1648_v1, %v418_v54  ;;  %v1175_v8 = vcvt.s32.f32 %v1031_v31 }
 0x2c2   :  { %v2168_v48 = vmul.f32 1.6732632, %v2474_v21  ;;  %v3717_v19 = vpop.f32.mrf.mxu1 }
 0x2c3   :  { %v1882_v18 = vadd.f32 %v3623_v16, %v1731_v49 }
 0x2c4   :  { %v2216_v40 = vsel %vm1928_vm7, %v1880_v13, %v2168_v48  ;;  %v1520_v9 = vpop.f32.mrf.mxu3  ;;  %v1247_v13 = vpack.c.bf16 %v1175_v8, %v1172_v51 }
 0x2c5   :  { %v2264_v43 = vmul.f32 1.050701, %v2216_v40  ;;  %v1978_v63 = vmin.f32 %v1882_v18, 0.0  ;;  %v1521_v23 = vadd.f32 %v1520_v9, %v3631_v32  ;;  %v3711_v32 = vld [vmem:[%s3822_s5 + $0x110] sm:$0xff]  ;;  %vm1930_vm9 = vcmp.gt.f32.partialorder %v1882_v18, 0.0 }
 0x2c6   :  { %1701 = vmatmul.bf16.gmra.mxu1 %v1247_v13  ;;  %v1024_v37 = vunpack.c.1.s8 %v3711_v32 }
 0x2c7   :  { %v2584_v53 = vpop.eup %2583  ;;  %2312 = vst [vmem:[#allocation3 + $0xb0] sm:$0xff] %v2264_v43  ;;  %v2050_v34 = vmul.f32 1.442695, %v1978_v63  ;;  %v1650_v46 = vadd.f32 %v3636_v45, %v1521_v23  ;;  %v1021_v45 = vunpack.c.0.s8 %v3711_v32 }
 0x2c8   :  { %v2475_v14 = vadd.f32 -1.0, %v2584_v53  ;;  %v1168_v54 = vcvt.s32.f32 %v1024_v37  ;;  %v3725_v7 = vpop.f32.mrf.mxu2  ;;  %v1030_v53 = vunpack.c.3.s8 %v3711_v32 }
 0x2c9   :  { %2585 = vpow2.f32 %v2050_v34  ;;  %v1732_v38 = vadd.f32 %v1650_v46, %v419_v22  ;;  %1562 = vmatmul.bf16.gmra.mxu3 %v1240_v24  ;;  %v1165_v25 = vcvt.s32.f32 %v1021_v45  ;;  %v1027_v24 = vunpack.c.2.s8 %v3711_v32 }
 0x2ca   :  { %v2169_v52 = vmul.f32 1.6732632, %v2475_v14  ;;  %v3728_v48 = vpop.f32.mrf.mxu1  ;;  %v422_v34 = vmul.f32 %v3613_v3, %v3229_v17 }
 0x2cb   :  { %v1883_v15 = vadd.f32 %v3623_v16, %v1732_v38  ;;  %v1243_v62 = vpack.c.bf16 %v1168_v54, %v1165_v25 }
 0x2cc   :  { %v2217_v35 = vsel %vm1929_vm8, %v1881_v56, %v2169_v52  ;;  %v1523_v26 = vpop.f32.mrf.mxu3 }
 0x2cd   :  { %v2265_v2 = vmul.f32 1.050701, %v2217_v35  ;;  %v1979_v4 = vmin.f32 %v1883_v15, 0.0  ;;  %v1524_v44 = vadd.f32 %v1523_v26, %v3642_v20  ;;  %vm1931_vm10 = vcmp.gt.f32.partialorder %v1883_v15, 0.0 }
 0x2ce   :  { %v1174_v35 = vcvt.s32.f32 %v1030_v53 }
 0x2cf   :  { %v2586_v29 = vpop.eup %2585  ;;  %2313 = vst [vmem:[#allocation3 + $0xb8] sm:$0xff] %v2265_v2  ;;  %v2052_v12 = vmul.f32 1.442695, %v1979_v4  ;;  %v1653_v39 = vadd.f32 %v3647_v5, %v1524_v44 }
 0x2d0   :  { %v2476_v56 = vadd.f32 -1.0, %v2586_v29  ;;  %v3737_v22 = vpop.f32.mrf.mxu2 }
 0x2d1   :  { %2587 = vpow2.f32 %v2052_v12  ;;  %v1733_v27 = vadd.f32 %v1653_v39, %v420_v11 }
 0x2d2   :  { %v2170_v28 = vmul.f32 1.6732632, %v2476_v56  ;;  %v3742_v38 = vpop.f32.mrf.mxu1 }
 0x2d3   :  { %v1884_v1 = vadd.f32 %v3623_v16, %v1733_v27 }
 0x2d4   :  { %v2218_v20 = vsel %vm1930_vm9, %v1882_v18, %v2170_v28  ;;  %v1525_v21 = vpop.f32.mrf.mxu3 }
 0x2d5   :  { %v2266_v49 = vmul.f32 1.050701, %v2218_v20  ;;  %v1980_v60 = vmin.f32 %v1884_v1, 0.0  ;;  %v1526_v47 = vadd.f32 %v1525_v21, %v3665_v59  ;;  %vm1932_vm11 = vcmp.gt.f32.partialorder %v1884_v1, 0.0 }
 0x2d7   :  { %v2588_v5 = vpop.eup %2587  ;;  %2314 = vst [vmem:[#allocation3 + $0xc0] sm:$0xff] %v2266_v49  ;;  %v2054_v40 = vmul.f32 1.442695, %v1980_v60  ;;  %v1655_v9 = vadd.f32 %v3670_v10, %v1526_v47 }
 0x2d8   :  { %v2477_v31 = vadd.f32 -1.0, %v2588_v5  ;;  %v3749_v39 = vpop.f32.mrf.mxu2 }
 0x2d9   :  { %2589 = vpow2.f32 %v2054_v40  ;;  %v1734_v18 = vadd.f32 %v1655_v9, %v421_v36  ;;  %1567 = vmatmul.bf16.gmra.mxu3 %v1243_v62 }
 0x2da   :  { %v2171_v43 = vmul.f32 1.6732632, %v2477_v31  ;;  %v3751_v25 = vpop.f32.mrf.mxu1 }
 0x2db   :  { %v1885_v63 = vadd.f32 %v3623_v16, %v1734_v18 }
 0x2dc   :  { %v2219_v59 = vsel %vm1931_vm10, %v1883_v15, %v2171_v43  ;;  %v1528_v23 = vpop.f32.mrf.mxu3  ;;  %v1171_v15 = vcvt.s32.f32 %v1027_v24 }
 0x2dd   :  { %v2267_v51 = vmul.f32 1.050701, %v2219_v59  ;;  %v1981_v8 = vmin.f32 %v1885_v63, 0.0  ;;  %v1529_v57 = vadd.f32 %v1528_v23, %v3681_v55  ;;  %vm1933_vm12 = vcmp.gt.f32.partialorder %v1885_v63, 0.0 }
 0x2de   :  { %v1246_v44 = vpack.c.bf16 %v1174_v35, %v1171_v15  ;;  %v425_v59 = vmul.f32 %v3613_v3, %v3250_v30 }
 0x2df   :  { %v2590_v10 = vpop.eup %2589  ;;  %2315 = vst [vmem:[#allocation3 + $0xc8] sm:$0xff] %v2267_v51  ;;  %v2056_v46 = vmul.f32 1.442695, %v1981_v8  ;;  %v1658_v14 = vadd.f32 %v3686_v33, %v1529_v57  ;;  %v423_v33 = vmul.f32 %v3613_v3, %v3242_v50 }
 0x2e0   :  { %v2478_v13 = vadd.f32 -1.0, %v2590_v10  ;;  %v1414_v36 = vpop.f32.mrf.mxu2 }
 0x2e1   :  { %2591 = vpow2.f32 %v2056_v46  ;;  %v1735_v52 = vadd.f32 %v1658_v14, %v422_v34 }
 0x2e2   :  { %v2172_v55 = vmul.f32 1.6732632, %v2478_v13  ;;  %v1672_v18 = vpop.f32.mrf.mxu1 }
 0x2e3   :  { %v1886_v32 = vadd.f32 %v3623_v16, %v1735_v52  ;;  %v426_v52 = vmul.f32 %v3613_v3, %v3258_v42  ;;  %v427_v42 = vmul.f32 %v3613_v3, %v3263_v58 }
 0x2e4   :  { %v2220_v26 = vsel %vm1932_vm11, %v1884_v1, %v2172_v55  ;;  %v1530_v45 = vpop.f32.mrf.mxu3 }
 0x2e5   :  { %v2268_v2 = vmul.f32 1.050701, %v2220_v26  ;;  %v1982_v4 = vmin.f32 %v1886_v32, 0.0  ;;  %v1531_v17 = vadd.f32 %v1530_v45, %v3697_v41  ;;  %vm1934_vm13 = vcmp.gt.f32.partialorder %v1886_v32, 0.0 }
 0x2e7   :  { %v2592_v37 = vpop.eup %2591  ;;  %2316 = vst [vmem:[#allocation3 + $0xd0] sm:$0xff] %v2268_v2  ;;  %v2058_v29 = vmul.f32 1.442695, %v1982_v4  ;;  %v1660_v11 = vadd.f32 %v3699_v61, %v1531_v17  ;;  %v424_v61 = vmul.f32 %v3613_v3, %v3248_v0 }
 0x2e8   :  { %v2479_v12 = vadd.f32 -1.0, %v2592_v37  ;;  %v1416_v34 = vpop.f32.mrf.mxu2 }
 0x2e9   :  { %2593 = vpow2.f32 %v2058_v29  ;;  %v1736_v56 = vadd.f32 %v1660_v11, %v423_v33  ;;  %1572 = vmatmul.bf16.gmra.mxu3 %v1246_v44 }
 0x2ea   :  { %v2173_v27 = vmul.f32 1.6732632, %v2479_v12  ;;  %v1674_v13 = vpop.f32.mrf.mxu1 }
 0x2eb   :  { %v1887_v41 = vadd.f32 %v3623_v16, %v1736_v56 }
 0x2ec   :  { %v2221_v54 = vsel %vm1933_vm12, %v1885_v63, %v2173_v27  ;;  %v1533_v28 = vpop.f32.mrf.mxu3 }
 0x2ed   :  { %v2269_v1 = vmul.f32 1.050701, %v2221_v54  ;;  %v1983_v50 = vmin.f32 %v1887_v41, 0.0  ;;  %v1534_v20 = vadd.f32 %v1533_v28, %v3713_v6  ;;  %vm1935_vm14 = vcmp.gt.f32.partialorder %v1887_v41, 0.0 }
 0x2ef   :  { %v2594_v21 = vpop.eup %2593  ;;  %2317 = vst [vmem:[#allocation3 + $0xd8] sm:$0xff] %v2269_v1  ;;  %v2060_v49 = vmul.f32 1.442695, %v1983_v50  ;;  %v1663_v60 = vadd.f32 %v3717_v19, %v1534_v20  ;;  %v3838_v20 = vld [vmem:[#allocation8_spill] sm:$0xff] }
 0x2f0   :  { %v2480_v47 = vadd.f32 -1.0, %v2594_v21  ;;  %v1419_v44 = vpop.f32.mrf.mxu2  ;;  %v428_v58 = vmul.f32 %v3613_v3, %v3838_v20 }
 0x2f1   :  { %2595 = vpow2.f32 %v2060_v49  ;;  %v1737_v62 = vadd.f32 %v1663_v60, %v424_v61 }
 0x2f2   :  { %v2174_v5 = vmul.f32 1.6732632, %v2480_v47  ;;  %v1677_v11 = vpop.f32.mrf.mxu1 }
 0x2f3   :  { %v1888_v40 = vadd.f32 %v3623_v16, %v1737_v62 }
 0x2f4   :  { %v2222_v9 = vsel %vm1934_vm13, %v1886_v32, %v2174_v5  ;;  %v1535_v31 = vpop.f32.mrf.mxu3 }
 0x2f5   :  { %v2270_v6 = vmul.f32 1.050701, %v2222_v9  ;;  %v1984_v43 = vmin.f32 %v1888_v40, 0.0  ;;  %v1536_v63 = vadd.f32 %v1535_v31, %v3725_v7  ;;  %vm1936_vm15 = vcmp.gt.f32.partialorder %v1888_v40, 0.0 }
 0x2f7   :  { %v2596_v0 = vpop.eup %2595  ;;  %2318 = vst [vmem:[#allocation3 + $0xe0] sm:$0xff] %v2270_v6  ;;  %v2062_v19 = vmul.f32 1.442695, %v1984_v43  ;;  %v1665_v23 = vadd.f32 %v3728_v48, %v1536_v63  ;;  %v3839_v63 = vld [vmem:[#allocation9_spill] sm:$0xff] }
 0x2f8   :  { %v2481_v24 = vadd.f32 -1.0, %v2596_v0  ;;  %v1421_v49 = vpop.f32.mrf.mxu2  ;;  %v429_v0 = vmul.f32 %v3613_v3, %v3839_v63  ;;  %v3843_v63 = vld [vmem:[#allocation13_spill] sm:$0xff] }
 0x2f9   :  { %2597 = vpow2.f32 %v2062_v19  ;;  %v1738_v51 = vadd.f32 %v1665_v23, %v425_v59 }
 0x2fa   :  { %v2175_v8 = vmul.f32 1.6732632, %v2481_v24  ;;  %v1679_v62 = vpop.f32.mrf.mxu1 }
 0x2fb   :  { %v1889_v57 = vadd.f32 %v3623_v16, %v1738_v51 }
 0x2fc   :  { %v2223_v53 = vsel %vm1935_vm14, %v1887_v41, %v2175_v8  ;;  %v1538_v10 = vpop.f32.mrf.mxu3 }
 0x2fd   :  { %v2271_v46 = vmul.f32 1.050701, %v2223_v53  ;;  %v1985_v7 = vmin.f32 %v1889_v57, 0.0  ;;  %v1539_v14 = vadd.f32 %v1538_v10, %v3737_v22  ;;  %vm1937_vm0 = vcmp.gt.f32.partialorder %v1889_v57, 0.0 }
 0x2ff   :  { %v2598_v30 = vpop.eup %2597  ;;  %2319 = vst [vmem:[#allocation3 + $0xe8] sm:$0xff] %v2271_v46  ;;  %v2064_v48 = vmul.f32 1.442695, %v1985_v7  ;;  %v1668_v15 = vadd.f32 %v3742_v38, %v1539_v14 }
 0x300   :  { %v2482_v35 = vadd.f32 -1.0, %v2598_v30  ;;  %v1424_v51 = vpop.f32.mrf.mxu2  ;;  %v3840_v30 = vld [vmem:[#allocation10_spill] sm:$0xff] }
 0x301   :  { %2599 = vpow2.f32 %v2064_v48  ;;  %v1739_v55 = vadd.f32 %v1668_v15, %v426_v52  ;;  %v430_v52 = vmul.f32 %v3613_v3, %v3840_v30  ;;  %v3844_v30 = vld [vmem:[#allocation14_spill] sm:$0xff] }
 0x302   :  { %v2176_v32 = vmul.f32 1.6732632, %v2482_v35  ;;  %v1682_v10 = vpop.f32.mrf.mxu1 }
 0x303   :  { %v1890_v26 = vadd.f32 %v3623_v16, %v1739_v55 }
 0x304   :  { %v2224_v45 = vsel %vm1936_vm15, %v1888_v40, %v2176_v32  ;;  %v1540_v2 = vpop.f32.mrf.mxu3 }
 0x305   :  { %v2272_v4 = vmul.f32 1.050701, %v2224_v45  ;;  %v1986_v22 = vmin.f32 %v1890_v26, 0.0  ;;  %v1541_v17 = vadd.f32 %v1540_v2, %v3749_v39  ;;  %vm1938_vm1 = vcmp.gt.f32.partialorder %v1890_v26, 0.0 }
 0x307   :  { %v2600_v37 = vpop.eup %2599  ;;  %2320 = vst [vmem:[#allocation3 + $0xf0] sm:$0xff] %v2272_v4  ;;  %v2066_v38 = vmul.f32 1.442695, %v1986_v22  ;;  %v1670_v33 = vadd.f32 %v3751_v25, %v1541_v17 }
 0x308   :  { %v2483_v29 = vadd.f32 -1.0, %v2600_v37  ;;  %v1426_v2 = vpop.f32.mrf.mxu2 }
 0x309   :  { %2601 = vpow2.f32 %v2066_v38  ;;  %v1740_v12 = vadd.f32 %v1670_v33, %v427_v42  ;;  %v3841_v42 = vld [vmem:[#allocation11_spill] sm:$0xff] }
 0x30a   :  { %v2177_v56 = vmul.f32 1.6732632, %v2483_v29  ;;  %v431_v38 = vmul.f32 %v3613_v3, %v3841_v42  ;;  %v3845_v42 = vld [vmem:[#allocation15_spill] sm:$0xff] }
 0x30b   :  { %v1891_v27 = vadd.f32 %v3623_v16, %v1740_v12 }
 0x30c   :  { %v2225_v41 = vsel %vm1937_vm0, %v1889_v57, %v2177_v56  ;;  %v1543_v54 = vpop.f32.mrf.mxu3 }
 0x30d   :  { %v2273_v39 = vmul.f32 1.050701, %v2225_v41  ;;  %v1987_v28 = vmin.f32 %v1891_v27, 0.0  ;;  %v1544_v1 = vadd.f32 %v1543_v54, %v1414_v36  ;;  %vm1939_vm2 = vcmp.gt.f32.partialorder %v1891_v27, 0.0 }
 0x30f   :  { %v2602_v50 = vpop.eup %2601  ;;  %2321 = vst [vmem:[#allocation3 + $0xf8] sm:$0xff] %v2273_v39  ;;  %v2068_v21 = vmul.f32 1.442695, %v1987_v28  ;;  %v1673_v25 = vadd.f32 %v1672_v18, %v1544_v1 }
 0x310   :  { %v2484_v61 = vadd.f32 -1.0, %v2602_v50  ;;  %v1429_v50 = vpop.f32.mrf.mxu2 }
 0x311   :  { %2603 = vpow2.f32 %v2068_v21  ;;  %v1741_v60 = vadd.f32 %v1673_v25, %v428_v58  ;;  %v3842_v58 = vld [vmem:[#allocation12_spill] sm:$0xff] }
 0x312   :  { %v2178_v47 = vmul.f32 1.6732632, %v2484_v61  ;;  %v432_v21 = vmul.f32 %v3613_v3, %v3842_v58 }
 0x313   :  { %v1892_v5 = vadd.f32 %v3623_v16, %v1741_v60 }
 0x314   :  { %v2226_v40 = vsel %vm1938_vm1, %v1890_v26, %v2178_v47  ;;  %v1545_v9 = vpop.f32.mrf.mxu3 }
 0x315   :  { %v2274_v31 = vmul.f32 1.050701, %v2226_v40  ;;  %v1988_v36 = vmin.f32 %v1892_v5, 0.0  ;;  %v1546_v6 = vadd.f32 %v1545_v9, %v1416_v34  ;;  %vm1940_vm3 = vcmp.gt.f32.partialorder %v1892_v5, 0.0 }
 0x317   :  { %v2604_v43 = vpop.eup %2603  ;;  %2322 = vst [vmem:[#allocation3 + $0x100] sm:$0xff] %v2274_v31  ;;  %v2070_v18 = vmul.f32 1.442695, %v1988_v36  ;;  %v1675_v59 = vadd.f32 %v1674_v13, %v1546_v6 }
 0x318   :  { %v2485_v19 = vadd.f32 -1.0, %v2604_v43 }
 0x319   :  { %2605 = vpow2.f32 %v2070_v18  ;;  %v1742_v23 = vadd.f32 %v1675_v59, %v429_v0  ;;  %v433_v0 = vmul.f32 %v3613_v3, %v3843_v63 }
 0x31a   :  { %v2179_v24 = vmul.f32 1.6732632, %v2485_v19 }
 0x31b   :  { %v1893_v8 = vadd.f32 %v3623_v16, %v1742_v23  ;;  %v1431_v23 = vpop.f32.mrf.mxu2 }
 0x31c   :  { %v2227_v57 = vsel %vm1939_vm2, %v1891_v27, %v2179_v24  ;;  %v1548_v53 = vpop.f32.mrf.mxu3 }
 0x31d   :  { %v2275_v46 = vmul.f32 1.050701, %v2227_v57  ;;  %v1989_v34 = vmin.f32 %v1893_v8, 0.0  ;;  %v1549_v7 = vadd.f32 %v1548_v53, %v1419_v44  ;;  %v1684_v44 = vpop.f32.mrf.mxu1  ;;  %vm1941_vm4 = vcmp.gt.f32.partialorder %v1893_v8, 0.0 }
 0x31f   :  { %v2606_v14 = vpop.eup %2605  ;;  %2323 = vst [vmem:[#allocation3 + $0x108] sm:$0xff] %v2275_v46  ;;  %v2072_v13 = vmul.f32 1.442695, %v1989_v34  ;;  %v1678_v48 = vadd.f32 %v1677_v11, %v1549_v7 }
 0x320   :  { %v2486_v15 = vadd.f32 -1.0, %v2606_v14 }
 0x321   :  { %2607 = vpow2.f32 %v2072_v13  ;;  %v1743_v35 = vadd.f32 %v1678_v48, %v430_v52  ;;  %v434_v52 = vmul.f32 %v3613_v3, %v3844_v30  ;;  %v3848_v30 = vld [vmem:[#allocation18_spill] sm:$0xff] }
 0x322   :  { %v2180_v55 = vmul.f32 1.6732632, %v2486_v15 }
 0x323   :  { %v1894_v32 = vadd.f32 %v3623_v16, %v1743_v35 }
 0x324   :  { %v2228_v26 = vsel %vm1940_vm3, %v1892_v5, %v2180_v55  ;;  %v1550_v45 = vpop.f32.mrf.mxu3 }
 0x325   :  { %v2276_v4 = vmul.f32 1.050701, %v2228_v26  ;;  %v1990_v22 = vmin.f32 %v1894_v32, 0.0  ;;  %v1551_v17 = vadd.f32 %v1550_v45, %v1421_v49  ;;  %v1687_v60 = vpop.f32.mrf.mxu1  ;;  %vm1942_vm5 = vcmp.gt.f32.partialorder %v1894_v32, 0.0 }
 0x327   :  { %v2608_v37 = vpop.eup %2607  ;;  %2324 = vst [vmem:[#allocation3 + $0x110] sm:$0xff] %v2276_v4  ;;  %v2074_v33 = vmul.f32 1.442695, %v1990_v22  ;;  %v1680_v29 = vadd.f32 %v1679_v62, %v1551_v17 }
 0x328   :  { %v2487_v11 = vadd.f32 -1.0, %v2608_v37 }
 0x329   :  { %2609 = vpow2.f32 %v2074_v33  ;;  %v1744_v12 = vadd.f32 %v1680_v29, %v431_v38  ;;  %v435_v38 = vmul.f32 %v3613_v3, %v3845_v42  ;;  %v3849_v42 = vld [vmem:[#allocation19_spill] sm:$0xff] }
 0x32a   :  { %v2181_v56 = vmul.f32 1.6732632, %v2487_v11 }
 0x32b   :  { %v1895_v27 = vadd.f32 %v3623_v16, %v1744_v12 }
 0x32c   :  { %v2229_v41 = vsel %vm1941_vm4, %v1893_v8, %v2181_v56  ;;  %v1553_v54 = vpop.f32.mrf.mxu3 }
 0x32d   :  { %v2277_v39 = vmul.f32 1.050701, %v2229_v41  ;;  %v1991_v28 = vmin.f32 %v1895_v27, 0.0  ;;  %v1554_v1 = vadd.f32 %v1553_v54, %v1424_v51  ;;  %v1689_v8 = vpop.f32.mrf.mxu1  ;;  %vm1943_vm6 = vcmp.gt.f32.partialorder %v1895_v27, 0.0 }
 0x32f   :  { %v2610_v20 = vpop.eup %2609  ;;  %2325 = vst [vmem:[#allocation3 + $0x118] sm:$0xff] %v2277_v39  ;;  %v2076_v25 = vmul.f32 1.442695, %v1991_v28  ;;  %v1683_v61 = vadd.f32 %v1682_v10, %v1554_v1 }
 0x330   :  { %v2488_v49 = vadd.f32 -1.0, %v2610_v20 }
 0x331   :  { %2611 = vpow2.f32 %v2076_v25  ;;  %v1745_v47 = vadd.f32 %v1683_v61, %v432_v21  ;;  %v3846_v21 = vld [vmem:[#allocation16_spill] sm:$0xff] }
 0x332   :  { %v2182_v62 = vmul.f32 1.6732632, %v2488_v49  ;;  %v436_v25 = vmul.f32 %v3613_v3, %v3846_v21  ;;  %v3850_v21 = vld [vmem:[#allocation6_spill] sm:$0xff] }
 0x333   :  { %v1896_v5 = vadd.f32 %v3623_v16, %v1745_v47 }
 0x334   :  { %v2230_v40 = vsel %vm1942_vm5, %v1894_v32, %v2182_v62  ;;  %v1555_v9 = vpop.f32.mrf.mxu3  ;;  %v1434_v32 = vpop.f32.mrf.mxu2 }
 0x335   :  { %v2278_v31 = vmul.f32 1.050701, %v2230_v40  ;;  %v1992_v36 = vmin.f32 %v1896_v5, 0.0  ;;  %v1556_v6 = vadd.f32 %v1555_v9, %v1426_v2  ;;  %vm1944_vm7 = vcmp.gt.f32.partialorder %v1896_v5, 0.0  ;;  %v1692_v4 = vpop.f32.mrf.mxu1 }
 0x337   :  { %v2612_v43 = vpop.eup %2611  ;;  %2326 = vst [vmem:[#allocation3 + $0x120] sm:$0xff] %v2278_v31  ;;  %v2078_v18 = vmul.f32 1.442695, %v1992_v36  ;;  %v1685_v59 = vadd.f32 %v1684_v44, %v1556_v6 }
 0x338   :  { %v2489_v19 = vadd.f32 -1.0, %v2612_v43 }
 0x339   :  { %2613 = vpow2.f32 %v2078_v18  ;;  %v1746_v24 = vadd.f32 %v1685_v59, %v433_v0  ;;  %v3847_v0 = vld [vmem:[#allocation17_spill] sm:$0xff] }
 0x33a   :  { %v2183_v51 = vmul.f32 1.6732632, %v2489_v19  ;;  %v437_v18 = vmul.f32 %v3613_v3, %v3847_v0  ;;  %v2635_v3 = vld [vmem:[%s3820_s3] ss:$0 sm:$0xff]  ;;  %s2663_s3 = smov [#allocation3]  }
 0x33b   :  { %v1897_v57 = vadd.f32 %v3623_v16, %v1746_v24 }
 0x33c   :  { %v2231_v53 = vsel %vm1943_vm6, %v1895_v27, %v2183_v51  ;;  %v1558_v10 = vpop.f32.mrf.mxu3  ;;  %v1436_v39 = vpop.f32.mrf.mxu2 }
 0x33d   :  { %v2279_v46 = vmul.f32 1.050701, %v2231_v53  ;;  %v1993_v34 = vmin.f32 %v1897_v57, 0.0  ;;  %v1559_v7 = vadd.f32 %v1558_v10, %v1429_v50  ;;  %vm1945_vm8 = vcmp.gt.f32.partialorder %v1897_v57, 0.0  ;;  %v1694_v20 = vpop.f32.mrf.mxu1 }
 0x33f   :  { %v2614_v14 = vpop.eup %2613  ;;  %2327 = vst [vmem:[#allocation3 + $0x128] sm:$0xff] %v2279_v46  ;;  %v2080_v13 = vmul.f32 1.442695, %v1993_v34  ;;  %v1688_v48 = vadd.f32 %v1687_v60, %v1559_v7 }
 0x340   :  { %v2490_v15 = vadd.f32 -1.0, %v2614_v14 }
 0x341   :  { %2615 = vpow2.f32 %v2080_v13  ;;  %v1747_v35 = vadd.f32 %v1688_v48, %v434_v52  ;;  %v438_v52 = vmul.f32 %v2635_v3, %v3848_v30 }
 0x342   :  { %v2184_v55 = vmul.f32 1.6732632, %v2490_v15 }
 0x343   :  { %v1898_v26 = vadd.f32 %v3623_v16, %v1747_v35 }
 0x344   :  { %v2232_v45 = vsel %vm1944_vm7, %v1896_v5, %v2184_v55  ;;  %v1560_v2 = vpop.f32.mrf.mxu3  ;;  %v1439_v43 = vpop.f32.mrf.mxu2 }
 0x345   :  { %v2280_v22 = vmul.f32 1.050701, %v2232_v45  ;;  %v1994_v17 = vmin.f32 %v1898_v26, 0.0  ;;  %v1561_v44 = vadd.f32 %v1560_v2, %v1431_v23  ;;  %vm1946_vm9 = vcmp.gt.f32.partialorder %v1898_v26, 0.0  ;;  %v1697_v24 = vpop.f32.mrf.mxu1 }
 0x347   :  { %v2616_v37 = vpop.eup %2615  ;;  %2328 = vst [vmem:[#allocation3 + $0x130] sm:$0xff] %v2280_v22  ;;  %v2082_v33 = vmul.f32 1.442695, %v1994_v17  ;;  %v1690_v29 = vadd.f32 %v1689_v8, %v1561_v44 }
 0x348   :  { %v2491_v11 = vadd.f32 -1.0, %v2616_v37 }
 0x349   :  { %2617 = vpow2.f32 %v2082_v33  ;;  %v1748_v12 = vadd.f32 %v1690_v29, %v435_v38  ;;  %v439_v38 = vmul.f32 %v2635_v3, %v3849_v42 }
 0x34a   :  { %v2185_v56 = vmul.f32 1.6732632, %v2491_v11 }
 0x34b   :  { %v1899_v27 = vadd.f32 %v3623_v16, %v1748_v12 }
 0x34c   :  { %v2233_v41 = vsel %vm1945_vm8, %v1897_v57, %v2185_v56  ;;  %v1563_v54 = vpop.f32.mrf.mxu3  ;;  %v1441_v35 = vpop.f32.mrf.mxu2 }
 0x34d   :  { %v2281_v28 = vmul.f32 1.050701, %v2233_v41  ;;  %v1995_v1 = vmin.f32 %v1899_v27, 0.0  ;;  %v1564_v50 = vadd.f32 %v1563_v54, %v1434_v32  ;;  %vm1947_vm10 = vcmp.gt.f32.partialorder %v1899_v27, 0.0  ;;  %v1699_v32 = vpop.f32.mrf.mxu1 }
 0x34f   :  { %v2618_v58 = vpop.eup %2617  ;;  %2329 = vst [vmem:[#allocation3 + $0x138] sm:$0xff] %v2281_v28  ;;  %v2084_v61 = vmul.f32 1.442695, %v1995_v1  ;;  %v1693_v49 = vadd.f32 %v1692_v4, %v1564_v50 }
 0x350   :  { %v2492_v60 = vadd.f32 -1.0, %v2618_v58 }
 0x351   :  { %2619 = vpow2.f32 %v2084_v61  ;;  %v1749_v47 = vadd.f32 %v1693_v49, %v436_v25  ;;  %v440_v25 = vmul.f32 %v2635_v3, %v3850_v21 }
 0x352   :  { %v2186_v62 = vmul.f32 1.6732632, %v2492_v60 }
 0x353   :  { %v1900_v5 = vadd.f32 %v3623_v16, %v1749_v47 }
 0x354   :  { %v2234_v40 = vsel %vm1946_vm9, %v1898_v26, %v2186_v62  ;;  %v1565_v9 = vpop.f32.mrf.mxu3  ;;  %v2636_v26 = vld [vmem:[%s3821_s4] ss:$0 sm:$0xff]  ;;  %s2342_s4 = sshll.u32 %s2663_s3, 4  ;;  %s2343_s4 = int_to_ptr.vmem [resolvable:$true] %s2342_s4 }
 0x355   :  { %v2282_v31 = vmul.f32 1.050701, %v2234_v40  ;;  %v1996_v36 = vmin.f32 %v1900_v5, 0.0  ;;  %v1566_v6 = vadd.f32 %v1565_v9, %v1436_v39  ;;  %vm1948_vm11 = vcmp.gt.f32.partialorder %v1900_v5, 0.0  ;;  %v1702_v28 = vpop.f32.mrf.mxu1 }
 0x357   :  { %v2620_v63 = vpop.eup %2619  ;;  %2330 = vst [vmem:[#allocation3 + $0x140] sm:$0xff] %v2282_v31  ;;  %v2086_v59 = vmul.f32 1.442695, %v1996_v36  ;;  %v1695_v19 = vadd.f32 %v1694_v20, %v1566_v6 }
 0x358   :  { %v2493_v23 = vadd.f32 -1.0, %v2620_v63 }
 0x359   :  { %2621 = vpow2.f32 %v2086_v59  ;;  %v1750_v51 = vadd.f32 %v1695_v19, %v437_v18  ;;  %v3851_v18 = vld [vmem:[#allocation7_spill] sm:$0xff] }
 0x35a   :  { %v2187_v8 = vmul.f32 1.6732632, %v2493_v23  ;;  %v441_v59 = vmul.f32 %v2635_v3, %v3851_v18 }
 0x35b   :  { %v1901_v57 = vadd.f32 %v3623_v16, %v1750_v51 }
 0x35c   :  { %v2235_v53 = vsel %vm1947_vm10, %v1899_v27, %v2187_v8  ;;  %v1568_v10 = vpop.f32.mrf.mxu3  ;;  %v1444_v27 = vpop.f32.mrf.mxu2 }
 0x35d   :  { %v2283_v46 = vmul.f32 1.050701, %v2235_v53  ;;  %v1997_v34 = vmin.f32 %v1901_v57, 0.0  ;;  %v1569_v7 = vadd.f32 %v1568_v10, %v1439_v43  ;;  %vm1949_vm12 = vcmp.gt.f32.partialorder %v1901_v57, 0.0  ;;  %v1704_v63 = vpop.f32.mrf.mxu1 }
 0x35f   :  { %v2622_v14 = vpop.eup %2621  ;;  %2331 = vst [vmem:[#allocation3 + $0x148] sm:$0xff] %v2283_v46  ;;  %v2088_v13 = vmul.f32 1.442695, %v1997_v34  ;;  %v1698_v48 = vadd.f32 %v1697_v24, %v1569_v7 }
 0x360   :  { %v2494_v15 = vadd.f32 -1.0, %v2622_v14 }
 0x361   :  { %2623 = vpow2.f32 %v2088_v13  ;;  %v1751_v55 = vadd.f32 %v1698_v48, %v438_v52 }
 0x362   :  { %v2188_v16 = vmul.f32 1.6732632, %v2494_v15 }
 0x363   :  { %v1902_v45 = vadd.f32 %v2636_v26, %v1751_v55 }
 0x364   :  { %v2236_v2 = vsel %vm1948_vm11, %v1900_v5, %v2188_v16  ;;  %v1570_v4 = vpop.f32.mrf.mxu3  ;;  %v1446_v9 = vpop.f32.mrf.mxu2 }
 0x365   :  { %v2284_v22 = vmul.f32 1.050701, %v2236_v2  ;;  %v1998_v17 = vmin.f32 %v1902_v45, 0.0  ;;  %v1571_v44 = vadd.f32 %v1570_v4, %v1441_v35  ;;  %vm1950_vm13 = vcmp.gt.f32.partialorder %v1902_v45, 0.0 }
 0x367   :  { %v2624_v37 = vpop.eup %2623  ;;  %2332 = vst [vmem:[#allocation3 + $0x150] sm:$0xff] %v2284_v22  ;;  %v2090_v33 = vmul.f32 1.442695, %v1998_v17  ;;  %v1700_v29 = vadd.f32 %v1699_v32, %v1571_v44 }
 0x368   :  { %v2495_v11 = vadd.f32 -1.0, %v2624_v37 }
 0x369   :  { %2625 = vpow2.f32 %v2090_v33  ;;  %v1752_v12 = vadd.f32 %v1700_v29, %v439_v38 }
 0x36a   :  { %v2189_v56 = vmul.f32 1.6732632, %v2495_v11 }
 0x36b   :  { %v1903_v41 = vadd.f32 %v2636_v26, %v1752_v12 }
 0x36c   :  { %v2237_v54 = vsel %vm1949_vm12, %v1901_v57, %v2189_v56  ;;  %v1573_v39 = vpop.f32.mrf.mxu3 }
 0x36d   :  { %v2285_v1 = vmul.f32 1.050701, %v2237_v54  ;;  %v1999_v50 = vmin.f32 %v1903_v41, 0.0  ;;  %v1574_v20 = vadd.f32 %v1573_v39, %v1444_v27  ;;  %vm1951_vm14 = vcmp.gt.f32.partialorder %v1903_v41, 0.0 }
 0x36f   :  { %v2626_v58 = vpop.eup %2625  ;;  %2333 = vst [vmem:[#allocation3 + $0x158] sm:$0xff] %v2285_v1  ;;  %v2092_v61 = vmul.f32 1.442695, %v1999_v50  ;;  %v1703_v49 = vadd.f32 %v1702_v28, %v1574_v20 }
 0x370   :  { %v2496_v60 = vadd.f32 -1.0, %v2626_v58 }
 0x371   :  { %2627 = vpow2.f32 %v2092_v61  ;;  %v1753_v47 = vadd.f32 %v1703_v49, %v440_v25 }
 0x372   :  { %v2190_v62 = vmul.f32 1.6732632, %v2496_v60 }
 0x373   :  { %v1904_v5 = vadd.f32 %v2636_v26, %v1753_v47 }
 0x374   :  { %v2238_v40 = vsel %vm1950_vm13, %v1902_v45, %v2190_v62  ;;  %v1575_v31 = vpop.f32.mrf.mxu3 }
 0x375   :  { %v2286_v36 = vmul.f32 1.050701, %v2238_v40  ;;  %v2000_v6 = vmin.f32 %v1904_v5, 0.0  ;;  %v1576_v43 = vadd.f32 %v1575_v31, %v1446_v9  ;;  %vm1952_vm15 = vcmp.gt.f32.partialorder %v1904_v5, 0.0 }
 0x377   :  { %v2628_v0 = vpop.eup %2627  ;;  %2334 = vst [vmem:[#allocation3 + $0x160] sm:$0xff] %v2286_v36  ;;  %v2094_v19 = vmul.f32 1.442695, %v2000_v6  ;;  %v1705_v23 = vadd.f32 %v1704_v63, %v1576_v43 }
 0x378   :  { %v2497_v24 = vadd.f32 -1.0, %v2628_v0 }
 0x379   :  { %2629 = vpow2.f32 %v2094_v19  ;;  %v1754_v51 = vadd.f32 %v1705_v23, %v441_v59 }
 0x37a   :  { %v2191_v8 = vmul.f32 1.6732632, %v2497_v24 }
 0x37b   :  { %v1905_v57 = vadd.f32 %v2636_v26, %v1754_v51 }
 0x37c   :  { %v2239_v53 = vsel %vm1951_vm14, %v1903_v41, %v2191_v8 }
 0x37d   :  { %v2287_v10 = vmul.f32 1.050701, %v2239_v53  ;;  %v2001_v46 = vmin.f32 %v1905_v57, 0.0  ;;  %vm1953_vm0 = vcmp.gt.f32.partialorder %v1905_v57, 0.0 }
 0x37f   :  { %v2630_v34 = vpop.eup %2629  ;;  %2335 = vst [vmem:[#allocation3 + $0x168] sm:$0xff] %v2287_v10  ;;  %v2096_v7 = vmul.f32 1.442695, %v2001_v46 }
 0x380   :  { %v2498_v14 = vadd.f32 -1.0, %v2630_v34 }
 0x381   :  { %2631 = vpow2.f32 %v2096_v7 }
 0x382   :  { %v2192_v30 = vmul.f32 1.6732632, %v2498_v14 }
 0x384   :  { %v2240_v3 = vsel %vm1952_vm15, %v1904_v5, %v2192_v30 }
 0x385   :  { %v2288_v52 = vmul.f32 1.050701, %v2240_v3 }
 0x387   :  { %v2632_v13 = vpop.eup %2631  ;;  %2336 = vst [vmem:[#allocation3 + $0x170] sm:$0xff] %v2288_v52 }
 0x388   :  { %v2499_v48 = vadd.f32 -1.0, %v2632_v13 }
 0x38a   :  { %v2193_v15 = vmul.f32 1.6732632, %v2499_v48 }
 0x38c   :  { %v2241_v35 = vsel %vm1953_vm0, %v1905_v57, %v2193_v15 }
 0x38d   :  { %v2289_v55 = vmul.f32 1.050701, %v2241_v35 }
 0x38f   :  { %2337 = vst [vmem:[#allocation3 + $0x178] sm:$0xff] %v2289_v55 }
 0x390   :  { %2350 = dma.vmem_to_hbm [thread:$0]  %s2343_s4, 6144, %s2345_s7, [#allocation4], %s2664_s8, %s2664_s8, %s2665_s9  }
 0x391   :  { %2661 = dma.done.wait [#allocation4], 6144  }
 0x392   :  { %2662 = vsyncadd [#allocation4], 4294961152 }
 0x393   :  { %2355 = vsyncpa [#allocation4], 1 }

</bundles_post_ra>
